<compile_context>
chip_gen: v6e
topology: v6e:2x2x1
jax: 0.10.0
libtpu: 0.0.40
codegen_flags: <defaults>
</compile_context>

<pallas_src>
import functools

import jax
import jax.numpy as jnp
from jax.experimental import pallas as pl
from jax.experimental.pallas import tpu as pltpu


def _round_up(n, m):
    return pl.cdiv(n, m) * m


def _classifier_kernel(x_ref, w1_ref, b1_ref, w2_ref, b2_ref, w3_ref, b3_ref,
                       o_ref, *, tau, compute_dtype):
    # Layer 1: MXU matmul in compute_dtype, f32 accumulate, f32 epilogue.
    h = jnp.dot(x_ref[...], w1_ref[...],
                preferred_element_type=jnp.float32) + b1_ref[...]
    h = jnp.maximum(h, 0.0)

    # Layer 2 (cast only the MXU operand; elementwise stays f32).
    h = jnp.dot(h.astype(compute_dtype), w2_ref[...],
                preferred_element_type=jnp.float32) + b2_ref[...]
    h = jnp.maximum(h, 0.0)

    # Layer 3: logits. Padded class columns carry a -1e30 bias -> exp() == 0.
    z = jnp.dot(h.astype(compute_dtype), w3_ref[...],
                preferred_element_type=jnp.float32) + b3_ref[...]

    # Softmax over the (padded, lane-dense) class axis.
    m = jnp.max(z, axis=-1, keepdims=True)
    e = jnp.exp(z - m)
    s = jnp.sum(e, axis=-1, keepdims=True)
    p = e * pl.reciprocal(s, approx=True)   # EUP reciprocal instead of VPU divide

    # Hardtanh(tau, 1 - tau) == clamp.
    o_ref[...] = jnp.clip(p, tau, 1.0 - tau).astype(o_ref.dtype)


def classifier_forward(x, params, tau, *, block_b=None, compute_dtype=jnp.float32):
    """x: [B, input_size] float32.  params: dict of torch-layout weights (w: [out, in])."""
    B, D_in = x.shape
    H = params["w1"].shape[0]
    C = params["w3"].shape[0]

    cd = jnp.dtype(compute_dtype)

    # Lane-dense padded sizes (last dim multiple of 128, sublane dims multiple of 8).
    D_p = _round_up(D_in, 128)
    H_p = _round_up(H, 128)
    C_p = _round_up(C, 128)

    # Batch tile: fixed, multiple of 8, big enough to amortize per-step overhead.
    if block_b is None:
        block_b = min(256, _round_up(B, 8))
    block_b = _round_up(block_b, 8)
    B_p = _round_up(B, block_b)

    # --- Pad / transpose parameters (plain-JAX glue, exact math) -------------------
    x_p = jnp.zeros((B_p, D_p), cd).at[:B, :D_in].set(x.astype(cd))
    w1 = jnp.zeros((D_p, H_p), cd).at[:D_in, :H].set(params["w1"].T.astype(cd))
    w2 = jnp.zeros((H_p, H_p), cd).at[:H, :H].set(params["w2"].T.astype(cd))
    w3 = jnp.zeros((H_p, C_p), cd).at[:H, :C].set(params["w3"].T.astype(cd))
    b1 = jnp.zeros((1, H_p), jnp.float32).at[0, :H].set(params["b1"].astype(jnp.float32))
    b2 = jnp.zeros((1, H_p), jnp.float32).at[0, :H].set(params["b2"].astype(jnp.float32))
    # Padded classes get a huge negative bias so softmax ignores them.
    b3 = jnp.full((1, C_p), -1e30, jnp.float32).at[0, :C].set(
        params["b3"].astype(jnp.float32))

    grid = (B_p // block_b,)

    # --- Explicit VMEM budget (v7x: 64 MiB physical, 32 MiB default scoped) --------
    vmem_est = (
        2 * (D_p * H_p + H_p * H_p + H_p * C_p) * cd.itemsize      # weights (2-buffered)
        + 2 * block_b * D_p * cd.itemsize                          # x tiles (2-buffered)
        + 2 * block_b * C_p * 4                                    # out tiles (2-buffered)
        + 2 * (2 * H_p + C_p) * 4                                  # biases
    )
    vmem_limit = None
    if vmem_est > (28 << 20):
        # Leave headroom for Mosaic's internal scratch; on huge H prefer bf16 weights
        # or an extra grid axis over W2/W3 instead of just raising the limit.
        vmem_limit = min(int(vmem_est * 2), 100 << 20)

    kernel = functools.partial(_classifier_kernel, tau=float(tau), compute_dtype=cd)

    out = pl.pallas_call(
        kernel,
        out_shape=jax.ShapeDtypeStruct((B_p, C_p), jnp.float32),
        grid_spec=pltpu.PrefetchScalarGridSpec(
            num_scalar_prefetch=0,
            grid=grid,
            in_specs=[
                pl.BlockSpec((block_b, D_p), lambda i: (i, 0)),  # x tile (pipelined)
                pl.BlockSpec((D_p, H_p), lambda i: (0, 0)),      # W1 (resident)
                pl.BlockSpec((1, H_p), lambda i: (0, 0)),        # b1
                pl.BlockSpec((H_p, H_p), lambda i: (0, 0)),      # W2
                pl.BlockSpec((1, H_p), lambda i: (0, 0)),        # b2
                pl.BlockSpec((H_p, C_p), lambda i: (0, 0)),      # W3
                pl.BlockSpec((1, C_p), lambda i: (0, 0)),        # b3
            ],
            out_specs=pl.BlockSpec((block_b, C_p), lambda i: (i, 0)),  # lane-dense store
        ),
        compiler_params=pltpu.CompilerParams(
            dimension_semantics=("parallel",),   # megacore-shards the batch axis on v7x
            vmem_limit_bytes=vmem_limit),
    )(x_p, w1, b1, w2, b2, w3, b3)

    # Slice away batch padding and padded class columns.
    return out[:B, :C]


def _init_params(key, input_size, hidden_size, num_classes):
    """Deterministic init mimicking torch.nn.Linear default (uniform +-1/sqrt(fan_in))."""
    ks = jax.random.split(key, 6)

    def lin(kw, kb, fan_in, fan_out):
        bound = 1.0 / jnp.sqrt(fan_in)
        w = jax.random.uniform(kw, (fan_out, fan_in), jnp.float32, -bound, bound)
        b = jax.random.uniform(kb, (fan_out,), jnp.float32, -bound, bound)
        return w, b

    w1, b1 = lin(ks[0], ks[1], input_size, hidden_size)
    w2, b2 = lin(ks[2], ks[3], hidden_size, hidden_size)
    w3, b3 = lin(ks[4], ks[5], hidden_size, num_classes)
    return {"w1": w1, "b1": b1, "w2": w2, "b2": b2, "w3": w3, "b3": b3}


def _reference_forward(x, params, tau):
    h = jnp.maximum(x @ params["w1"].T + params["b1"], 0.0)
    h = jnp.maximum(h @ params["w2"].T + params["b2"], 0.0)
    z = h @ params["w3"].T + params["b3"]
    p = jax.nn.softmax(z, axis=1)
    return jnp.clip(p, tau, 1.0 - tau)


if __name__ == "__main__":
    key = jax.random.PRNGKey(0)
    k_x, k_p = jax.random.split(key)

    batch = 512          # -> grid=(2,) with block_b=256: pipelined, megacore-parallel
    input_size = 16
    hidden_size = 32
    num_classes = 4
    tau = 1e-4

    x = jax.random.normal(k_x, (batch, input_size), jnp.float32)
    params = _init_params(k_p, input_size, hidden_size, num_classes)
    ref = _reference_forward(x, params, tau)

    # f32 MXU operands (exact layer math; tolerance covers the EUP approx reciprocal).
    out_f32 = jax.block_until_ready(classifier_forward(x, params, tau))
    assert out_f32.shape == (batch, num_classes)
    assert jnp.allclose(out_f32, ref, atol=1e-3, rtol=1e-3), "f32 kernel mismatch"

    # bf16 MXU operands, f32 accumulate/epilogue (v6e/v7x fast path).
    out_bf16 = jax.block_until_ready(
        classifier_forward(x, params, tau, compute_dtype=jnp.bfloat16))
    assert out_bf16.shape == (batch, num_classes)
    assert jnp.allclose(out_bf16, ref, atol=2e-2, rtol=2e-2), "bf16 kernel mismatch"

    print("KERNEL_OK")
</pallas_src>

<mosaic_0001>
module attributes {stable_mosaic.version = 11 : i64} {
  func.func @_classifier_kernel(%arg0: i32, %arg1: memref<256x128xf32, #tpu.memory_space<vmem>>, %arg2: memref<128x128xf32, #tpu.memory_space<vmem>>, %arg3: memref<1x128xf32, #tpu.memory_space<vmem>>, %arg4: memref<128x128xf32, #tpu.memory_space<vmem>>, %arg5: memref<1x128xf32, #tpu.memory_space<vmem>>, %arg6: memref<128x128xf32, #tpu.memory_space<vmem>>, %arg7: memref<1x128xf32, #tpu.memory_space<vmem>>, %arg8: memref<256x128xf32, #tpu.memory_space<vmem>>) attributes {dimension_semantics = [#tpu.dimension_semantics<parallel>], iteration_bounds = array<i64: 2>, scalar_prefetch = 0 : i64, scratch_operands = 0 : i64, tpu.core_type = #tpu.core_type<tc>, window_params = [{transform_indices = @transform_0, window_bounds = array<i64: 256, 128>}, {pipeline_mode = #tpu.pipeline_mode<synchronous>, transform_indices = @transform_1, window_bounds = array<i64: 128, 128>}, {pipeline_mode = #tpu.pipeline_mode<synchronous>, transform_indices = @transform_2, window_bounds = array<i64: 1, 128>}, {pipeline_mode = #tpu.pipeline_mode<synchronous>, transform_indices = @transform_3, window_bounds = array<i64: 128, 128>}, {pipeline_mode = #tpu.pipeline_mode<synchronous>, transform_indices = @transform_4, window_bounds = array<i64: 1, 128>}, {pipeline_mode = #tpu.pipeline_mode<synchronous>, transform_indices = @transform_5, window_bounds = array<i64: 128, 128>}, {pipeline_mode = #tpu.pipeline_mode<synchronous>, transform_indices = @transform_6, window_bounds = array<i64: 1, 128>}, {transform_indices = @transform_7, window_bounds = array<i64: 256, 128>}]} {
    %c0 = arith.constant 0 : index
    %c0_0 = arith.constant 0 : index
    %0 = vector.load %arg1[%c0, %c0_0] : memref<256x128xf32, #tpu.memory_space<vmem>>, vector<256x128xf32>
    %c0_1 = arith.constant 0 : index
    %c0_2 = arith.constant 0 : index
    %1 = vector.load %arg2[%c0_1, %c0_2] : memref<128x128xf32, #tpu.memory_space<vmem>>, vector<128x128xf32>
    %cst = arith.constant dense<0.000000e+00> : vector<256x128xf32>
    %2 = tpu.matmul %0, %1, %cst {dimension_numbers = #tpu.dot_dimension_numbers<[1], [0], [0], [1], [0, 0, 1, 1], [], []>} : vector<256x128xf32>, vector<128x128xf32>, vector<256x128xf32> -> vector<256x128xf32>
    %c0_3 = arith.constant 0 : index
    %c0_4 = arith.constant 0 : index
    %3 = vector.load %arg3[%c0_3, %c0_4] : memref<1x128xf32, #tpu.memory_space<vmem>>, vector<1x128xf32>
    %4 = vector.broadcast %3 : vector<1x128xf32> to vector<256x128xf32>
    %5 = arith.addf %2, %4 : vector<256x128xf32>
    %cst_5 = arith.constant 0.000000e+00 : f32
    %6 = vector.broadcast %cst_5 : f32 to vector<256x128xf32>
    %7 = arith.maximumf %5, %6 : vector<256x128xf32>
    %c0_6 = arith.constant 0 : index
    %c0_7 = arith.constant 0 : index
    %8 = vector.load %arg4[%c0_6, %c0_7] : memref<128x128xf32, #tpu.memory_space<vmem>>, vector<128x128xf32>
    %cst_8 = arith.constant dense<0.000000e+00> : vector<256x128xf32>
    %9 = tpu.matmul %7, %8, %cst_8 {dimension_numbers = #tpu.dot_dimension_numbers<[1], [0], [0], [1], [0, 0, 1, 1], [], []>} : vector<256x128xf32>, vector<128x128xf32>, vector<256x128xf32> -> vector<256x128xf32>
    %c0_9 = arith.constant 0 : index
    %c0_10 = arith.constant 0 : index
    %10 = vector.load %arg5[%c0_9, %c0_10] : memref<1x128xf32, #tpu.memory_space<vmem>>, vector<1x128xf32>
    %11 = vector.broadcast %10 : vector<1x128xf32> to vector<256x128xf32>
    %12 = arith.addf %9, %11 : vector<256x128xf32>
    %cst_11 = arith.constant 0.000000e+00 : f32
    %13 = vector.broadcast %cst_11 : f32 to vector<256x128xf32>
    %14 = arith.maximumf %12, %13 : vector<256x128xf32>
    %c0_12 = arith.constant 0 : index
    %c0_13 = arith.constant 0 : index
    %15 = vector.load %arg6[%c0_12, %c0_13] : memref<128x128xf32, #tpu.memory_space<vmem>>, vector<128x128xf32>
    %cst_14 = arith.constant dense<0.000000e+00> : vector<256x128xf32>
    %16 = tpu.matmul %14, %15, %cst_14 {dimension_numbers = #tpu.dot_dimension_numbers<[1], [0], [0], [1], [0, 0, 1, 1], [], []>} : vector<256x128xf32>, vector<128x128xf32>, vector<256x128xf32> -> vector<256x128xf32>
    %c0_15 = arith.constant 0 : index
    %c0_16 = arith.constant 0 : index
    %17 = vector.load %arg7[%c0_15, %c0_16] : memref<1x128xf32, #tpu.memory_space<vmem>>, vector<1x128xf32>
    %18 = vector.broadcast %17 : vector<1x128xf32> to vector<256x128xf32>
    %19 = arith.addf %16, %18 : vector<256x128xf32>
    %cst_17 = arith.constant dense<0xFF800000> : vector<256xf32>
    %20 = vector.multi_reduction <maximumf>, %19, %cst_17 [1] : vector<256x128xf32> to vector<256xf32>
    %21 = vector.shape_cast %20 : vector<256xf32> to vector<256x1xf32>
    %22 = vector.broadcast %21 : vector<256x1xf32> to vector<256x128xf32>
    %23 = arith.subf %19, %22 : vector<256x128xf32>
    %24 = math.exp %23 : vector<256x128xf32>
    %cst_18 = arith.constant dense<0.000000e+00> : vector<256xf32>
    %25 = vector.multi_reduction <add>, %24, %cst_18 [1] : vector<256x128xf32> to vector<256xf32>
    %26 = vector.shape_cast %25 : vector<256xf32> to vector<256x1xf32>
    %27 = tpu.reciprocal %26 {approx = true} : vector<256x1xf32> -> vector<256x1xf32>
    %28 = vector.broadcast %27 : vector<256x1xf32> to vector<256x128xf32>
    %29 = arith.mulf %24, %28 : vector<256x128xf32>
    %cst_19 = arith.constant 9.99999974E-5 : f32
    %cst_20 = arith.constant 0.999899983 : f32
    %30 = vector.broadcast %cst_19 : f32 to vector<256x128xf32>
    %31 = arith.maximumf %30, %29 : vector<256x128xf32>
    %32 = vector.broadcast %cst_20 : f32 to vector<256x128xf32>
    %33 = arith.minimumf %32, %31 : vector<256x128xf32>
    %c0_21 = arith.constant 0 : index
    %c0_22 = arith.constant 0 : index
    %34 = vector.load %arg8[%c0_21, %c0_22] : memref<256x128xf32, #tpu.memory_space<vmem>>, vector<256x128xf32>
    tpu.vector_store %arg8[%c0_21, %c0_22], %33 {strides = array<i32>} : memref<256x128xf32, #tpu.memory_space<vmem>>, vector<256x128xf32>,
    return
  }
  func.func @transform_0(%arg0: i32) -> (i32, i32) {
    %c0_i32 = arith.constant 0 : i32
    %c0_i32_0 = arith.constant 0 : i32
    return %arg0, %c0_i32 : i32, i32
  }
  func.func @transform_1(%arg0: i32) -> (i32, i32) {
    %c0_i32 = arith.constant 0 : i32
    %c0_i32_0 = arith.constant 0 : i32
    %c0_i32_1 = arith.constant 0 : i32
    return %c0_i32, %c0_i32_0 : i32, i32
  }
  func.func @transform_2(%arg0: i32) -> (i32, i32) {
    %c0_i32 = arith.constant 0 : i32
    %c0_i32_0 = arith.constant 0 : i32
    %c0_i32_1 = arith.constant 0 : i32
    return %c0_i32, %c0_i32_0 : i32, i32
  }
  func.func @transform_3(%arg0: i32) -> (i32, i32) {
    %c0_i32 = arith.constant 0 : i32
    %c0_i32_0 = arith.constant 0 : i32
    %c0_i32_1 = arith.constant 0 : i32
    return %c0_i32, %c0_i32_0 : i32, i32
  }
  func.func @transform_4(%arg0: i32) -> (i32, i32) {
    %c0_i32 = arith.constant 0 : i32
    %c0_i32_0 = arith.constant 0 : i32
    %c0_i32_1 = arith.constant 0 : i32
    return %c0_i32, %c0_i32_0 : i32, i32
  }
  func.func @transform_5(%arg0: i32) -> (i32, i32) {
    %c0_i32 = arith.constant 0 : i32
    %c0_i32_0 = arith.constant 0 : i32
    %c0_i32_1 = arith.constant 0 : i32
    return %c0_i32, %c0_i32_0 : i32, i32
  }
  func.func @transform_6(%arg0: i32) -> (i32, i32) {
    %c0_i32 = arith.constant 0 : i32
    %c0_i32_0 = arith.constant 0 : i32
    %c0_i32_1 = arith.constant 0 : i32
    return %c0_i32, %c0_i32_0 : i32, i32
  }
  func.func @transform_7(%arg0: i32) -> (i32, i32) {
    %c0_i32 = arith.constant 0 : i32
    %c0_i32_0 = arith.constant 0 : i32
    return %arg0, %c0_i32 : i32, i32
  }
}

</mosaic_0001>

<bundles_post_ra>
// kernel: tpu_custom_call.1
= control target key start
LH: loop header
LB: loop body
LE: loop exit
PB: predicated region body
PF: predicated region fallthrough
CT: control target
= control target key end

     0   :  { %s3223_s0 = inlined_call_operand.hbm [shape: f32[512,128], index: 0, kind: input, shape index: {}]   ;;  %s3224_s1 = inlined_call_operand.hbm [shape: f32[128,128], index: 1, kind: input, shape index: {}]   ;;  %s3225_s2 = inlined_call_operand.vmem [shape: f32[1,128], index: 2, kind: input, shape index: {}]   ;;  %s3226_s3 = inlined_call_operand.hbm [shape: f32[128,128], index: 3, kind: input, shape index: {}]   ;;  %s3227_s4 = inlined_call_operand.vmem [shape: f32[1,128], index: 4, kind: input, shape index: {}]   ;;  %s3228_s5 = inlined_call_operand.hbm [shape: f32[128,128], index: 5, kind: input, shape index: {}]   ;;  %s3229_s6 = inlined_call_operand.vmem [shape: f32[1,128], index: 6, kind: input, shape index: {}]   ;;  %s3230_s7 = inlined_call_operand.hbm [shape: f32[512,128], index: 7, kind: output, shape index: {}]  }
   0x1   :  { %3237 = sst [smem:[#allocation15_spill]] %s3224_s1 }
   0x2   :  { %12 = vsyncpa [#allocation3], 0 }
   0x3   :  { %14 = vsyncpa [#allocation3 + $0x1], 0 }
   0x4   :  { %15 = vsyncpa [#allocation6], 0 }
   0x5   :  { %16 = vsyncpa [#allocation9], 0 }
   0x6   :  { %17 = vsyncpa [#allocation4], 0 }
   0x7   :  { %19 = vsyncpa [#allocation4 + $0x1], 0  ;;  %s2562_s24 = smov 0   ;;  %s2564_s25 = smov 0  }
   0x8   :  { %s2566_s26 = smov 0   ;;  %s2568_s27 = smov 0  }
   0x9 LB: > { %s2583_s28 = sadd.s32 4294967295, %s2511_s27   ;;  %s1683_s29 = sadd.s32 4294967294, %s2511_s27   ;;  %s2511_s27 = sphi %s2568_s27, %s3259_s27   ;;  %s2507_s26 = sphi %s2566_s26, %s3258_s26   ;;  %s2503_s25 = sphi %s2564_s25, %s3257_s25   ;;  %s2499_s24 = sphi %s2562_s24, %s3256_s24  }
   0xa   : > { %p45_p0 = scmp.ne.s32.totalorder %s2503_s25, %s2499_s24  ;;  %p3231_p1 = scmp.eq.s32.totalorder %s2583_s28, 0 }
   0xb   : > { %p195_p2 = scmp.eq.s32.totalorder %s2583_s28, 1  ;;  %p201_p3 = scmp.eq.s32.totalorder %s1683_s29, 1 }
   0xc   : > { %p2592_p4 = por %p3231_p1, %p45_p0  ;;  %p1684_p5 = scmp.ge.s32.totalorder %s2511_s27, 1 }
   0xd   : > { %p2597_p6 = por %p201_p3, %p45_p0  ;;  %p208_p7 = scmp.lt.s32.totalorder %s2511_s27, 3 }
   0xe   : > { %s3238_s30 = scalar_select %p2592_p4, 1, 0 }
   0xf   : > { %s3239_s8 = scalar_select %p2597_p6, 1, 0 }
  0x10   : > { %p2602_p8 = pnand %p1684_p5, %p208_p7  ;;  %s2513_s10 = smov [#allocation5]  }
  0x11   : > { %s220_s11 = sshll.u32 %s2513_s10, 4  ;;  %s2514_s13 = smov [#allocation7]   ;;  %s221_s11 = int_to_ptr.vmem [resolvable:$true] %s220_s11 }
  0x12   : > { %s3240_s9 = scalar_select %p2602_p8, 1, 0 }
  0x13   : > { %p2140_p9 = pneg %p2602_p8  ;;  %s236_s14 = sshll.u32 %s2514_s13, 4  ;;  %s237_s14 = int_to_ptr.vmem [resolvable:$true] %s236_s14 }
  0x14   : > { %s2515_s15 = smov [#allocation8]   ;;  %s2344_s17 = scalar_lea.vmem %s221_s11, 2048 }
  0x15   : > { %p2611_p11 = pnand %p2140_p9, %p3231_p1  ;;  %s252_s16 = sshll.u32 %s2515_s15, 4  ;;  %s253_s16 = int_to_ptr.vmem [resolvable:$true] %s252_s16 }
  0x16   : > { %p2345_p13 = scmp.ne.s32.totalorder %s221_s11, %s2344_s17  ;;  %p2352_p5 = scmp.lt.s32.totalorder %s221_s11, %s221_s11 }
  0x17   : > { %p2335_p12 = pneg %p2611_p11  ;;  %p2353_p7 = scmp.lt.s32.totalorder %s2344_s17, %s2344_s17 }
  0x19   : > { %p2347_p0 = pnand %p2345_p13, %p2335_p12  ;;  %p2354_p9 = por %p2353_p7, %p2352_p5 }
  0x1b   : > { %p2348_p3 = pneg %p2347_p0 }
  0x1d   : > { %p2355_p10 = pnand %p2354_p9, %p2348_p3 }
  0x1f   : > { %2358 = shalt.err (!%p2355_p10)
}
  0x20   : > { %s3232_s18 = smov 128   ;;  %s3233_s19 = smov 8  }
  0x21   : > { %s3242_s1 = sld [smem:[#allocation15_spill]]  ;;  %s2370_s22 = scalar_lea.vmem %s237_s14, 2048 }
  0x22   : > { %p2371_p13 = scmp.ne.s32.totalorder %s237_s14, %s2370_s22  ;;  %p2378_p3 = scmp.lt.s32.totalorder %s237_s14, %s237_s14 }
  0x23   : > { %p2379_p10 = scmp.lt.s32.totalorder %s2370_s22, %s2370_s22 }
  0x24   : > { %p2373_p0 = pnand %p2371_p13, %p2335_p12 }
  0x25   : > { %p2380_p7 = por %p2379_p10, %p2378_p3 }
  0x26   : > { %p2374_p5 = pneg %p2373_p0 }
  0x27   : > { %2143 = dma.hbm_to_vmem [thread:$0]  (!%p2611_p11), %s3242_s1, 2048, %s221_s11, [#allocation6], %s3232_s18, %s3232_s18, %s3233_s19  }
  0x28   : > { %p2381_p9 = pnand %p2380_p7, %p2374_p5 }
  0x2a   : > { %2384 = shalt.err (!%p2381_p9)
}
  0x2b   : > { %2146 = dma.hbm_to_vmem [thread:$0]  (!%p2611_p11), %s3226_s3, 2048, %s237_s14, [#allocation6], %s3232_s18, %s3232_s18, %s3233_s19  }
  0x2c   : > { %s2396_s10 = scalar_lea.vmem %s253_s16, 2048  ;;  %p2404_p3 = scmp.lt.s32.totalorder %s253_s16, %s253_s16 }
  0x2d   : > { %p2397_p1 = scmp.ne.s32.totalorder %s253_s16, %s2396_s10  ;;  %p2405_p5 = scmp.lt.s32.totalorder %s2396_s10, %s2396_s10 }
  0x2f   : > { %p2399_p13 = pnand %p2397_p1, %p2335_p12  ;;  %p2406_p10 = por %p2405_p5, %p2404_p3 }
  0x31   : > { %p2400_p0 = pneg %p2399_p13 }
  0x33   : > { %p2407_p7 = pnand %p2406_p10, %p2400_p0 }
  0x35   : > { %2410 = shalt.err (!%p2407_p7)
}
  0x36   : > { %2149 = dma.hbm_to_vmem [thread:$0]  (!%p2611_p11), %s3228_s5, 2048, %s253_s16, [#allocation9], %s3232_s18, %s3232_s18, %s3233_s19  }
  0x37   : > { %s2651_s14 = sadd.s32 1, %s2511_s27   ;;  %s32_s15 = sadd.s32 1, %s2507_s26 }
  0x38   : > { %s29_s12 = ssub.s32 %s2511_s27, %s2651_s14  ;;  %p39_p12 = scmp.ne.s32.totalorder %s2507_s26, %s2503_s25 }
  0x39   : > { %p30_p1 = scmp.eq.s32.totalorder %s29_s12, 0  ;;  %p40_p9 = scmp.eq.s32.totalorder %s2511_s27, 0 }
  0x3a   : > { %p2161_p13 = scmp.lt.s32.totalorder %s2511_s27, 2  ;;  %p2665_p3 = por %p195_p2, %p39_p12 }
  0x3b   : > { %s2661_s17 = scalar_select %p30_p1, %s2507_s26, %s32_s15  }
  0x3c   : > { %p41_p0 = por %p40_p9, %p39_p12  ;;  %s269_s21 = sand.u32 1, %s2507_s26  }
  0x3d   : > { %s3243_s20 = scalar_select %p2665_p3, 1, 0 }
  0x3e   : > { %s1706_s22 = sshll.u32 %s2511_s27, 12  ;;  %s1689_s16 = sshll.u32 %s269_s21, 8 }
  0x3f   : > { %s2674_s10 = scalar_lea.hbm %s3223_s0, %s1706_s22  ;;  %s273_s11 = scalar_lea.vmem [#allocation2], %s1689_s16 }
  0x40   : > { %s280_s13 = sshll.u32 %s273_s11, 4  ;;  %p2676_p11 = pnand %p2161_p13, %p41_p0  ;;  %s2680_s13 = int_to_ptr.vmem [resolvable:$true] %s280_s13 }
  0x41   : > { %s2682_s15 = scalar_lea.sflag [#allocation3], %s269_s21  ;;  %s2411_s18 = scalar_lea.hbm %s2674_s10, 4096 }
  0x42   : > { %p2412_p2 = scmp.ne.s32.totalorder %s2674_s10, %s2411_s18  ;;  %p2413_p5 = pneg %p2676_p11 }
  0x43   : > { %s2416_s16 = scalar_lea.hbm %s3223_s0, 8192  ;;  %p2417_p1 = scmp.lt.s32.totalorder %s2674_s10, %s3223_s0 }
  0x44   : > { %p2414_p10 = pnand %p2413_p5, %p2412_p2  ;;  %p2418_p12 = scmp.lt.s32.totalorder %s2416_s16, %s2411_s18 }
  0x46   : > { %p2415_p7 = pneg %p2414_p10  ;;  %p2419_p9 = por %p2418_p12, %p2417_p1 }
  0x48   : > { %p2420_p13 = pnand %p2419_p9, %p2415_p7 }
  0x4a   : > { %2423 = shalt.err (!%p2420_p13)
}
  0x4b   : > { %s2424_s21 = scalar_lea.vmem %s2680_s13, 4096  ;;  %s2518_s19 = smov [#allocation2]  }
  0x4c   : > { %p2425_p0 = scmp.ne.s32.totalorder %s2680_s13, %s2424_s21  ;;  %s2429_s1 = sshll.u32 %s2518_s19, 4  ;;  %s2430_s1 = int_to_ptr.vmem [resolvable:$false] %s2429_s1 }
  0x4d   : > { %s2431_s22 = scalar_lea.vmem %s2430_s1, 8192  ;;  %p2432_p10 = scmp.lt.s32.totalorder %s2680_s13, %s2430_s1 }
  0x4e   : > { %p2427_p6 = pnand %p2425_p0, %p2413_p5  ;;  %p2433_p3 = scmp.lt.s32.totalorder %s2431_s22, %s2424_s21 }
  0x50   : > { %p2428_p2 = pneg %p2427_p6  ;;  %p2434_p4 = por %p2433_p3, %p2432_p10 }
  0x52   : > { %p2435_p8 = pnand %p2434_p4, %p2428_p2 }
  0x54   : > { %2438 = shalt.err (!%p2435_p8)
}
  0x55   : > { %s3245_s18 = smov 8   ;;  %s3246_s23 = smov 128  }
  0x56   : > { %2153 = dma.hbm_to_vmem [thread:$0]  (!%p2676_p11), %s2674_s10, 4096, %s2680_s13, %s2682_s15, %s3246_s23, %s3246_s23, %s3245_s18  }
  0x57   : > { %p3247_p6 = scmp.ne.s32.totalorder %s3240_s9, 0 }
  0x58   : > { %s2709_s19 = sand.u32 (!%p3247_p6), 1, %s2503_s25   ;;  %p3248_p4 = scmp.ne.s32.totalorder (!%p3247_p6), %s3238_s30, 0 }
  0x59   : > { %292 = sbr.rel (%p3247_p6) target bundleno = 1123 (0x463), region = 48  ;;  %s1693_s1 = sshll.u32 (!%p3247_p6), %s2709_s19, 8 }
  0x5a   : > { %s295_s16 = scalar_lea.sflag (!%p3247_p6), [#allocation3], %s2709_s19  ;;  %s2715_s12 = scalar_lea.vmem (!%p3247_p6), [#allocation2], %s1693_s1 }
  0x5e   : > { %2482 = dma.done.wait (%p3248_p4), %s295_s16, 4096  }
  0x5f   : > { %2484 = vsyncadd (%p3248_p4), %s295_s16, 4294963200  ;;  %p3249_p8 = scmp.eq.s32.totalorder %s2583_s28, 0 }
  0x61   : > { %2486 = dma.done.wait (%p3249_p8), [#allocation6], 4096   ;;  %p3250_p3 = pmov %p3249_p8 }
  0x63   : > { %2488 = vsyncadd (%p3250_p3), [#allocation6], 4294963200  ;;  %p3251_p11 = pmov %p3250_p3 }
  0x64   : > { %p3252_p5 = pmov %p3250_p3 }
  0x65   : > { %2490 = dma.done.wait (%p3251_p11), [#allocation9], 2048  }
  0x66   : > { %2492 = vsyncadd (%p3252_p5), [#allocation9], 4294965248  ;;  %v390_v0 = vld [vmem:[#allocation5 + $0x78] sm:$0xff]  ;;  %v389_v1 = vld [vmem:[#allocation5 + $0x70] sm:$0xff]  ;;  %s3110_s11 = scalar_lea.vmem [#allocation10], %s1693_s1  ;;  %s1707_s21 = sshll.u32 %s2583_s28, 12 }
  0x67   : > { %1852 = vmatprep.subr.mxu0 %v390_v0  ;;  %2092 = vmatprep.subr.mxu1 %v390_v0  ;;  %v388_v2 = vld [vmem:[#allocation5 + $0x68] sm:$0xff]  ;;  %v387_v3 = vld [vmem:[#allocation5 + $0x60] sm:$0xff]  ;;  %v386_v5 = vld [vmem:[#allocation5 + $0x58] sm:$0xff]  ;;  %s1581_s22 = sshll.u32 %s3110_s11, 4  ;;  %s3176_s1 = scalar_lea.hbm %s3230_s7, %s1707_s21  ;;  %s3178_s22 = int_to_ptr.vmem [resolvable:$true] %s1581_s22 }
  0x68   : > { %1853 = vmatpush3.msra.mxu0 %v390_v0  ;;  %2108 = vmatpush3.msra.mxu1 %v390_v0  ;;  %v343_v4 = vld [vmem:[%s2715_s12] sm:$0xff]  ;;  %v385_v6 = vld [vmem:[#allocation5 + $0x50] sm:$0xff]  ;;  %v384_v7 = vld [vmem:[#allocation5 + $0x48] sm:$0xff]  ;;  %s1568_s28 = scalar_lea.sflag [#allocation4], %s2709_s19  ;;  %s2439_s16 = scalar_lea.vmem %s3178_s22, 4096 }
  0x69   : > { %1854 = vmatprep.subr.mxu0 %v389_v1  ;;  %2093 = vmatprep.subr.mxu1 %v389_v1  ;;  %v383_v8 = vld [vmem:[#allocation5 + $0x40] sm:$0xff]  ;;  %v382_v9 = vld [vmem:[#allocation5 + $0x38] sm:$0xff]  ;;  %v381_v10 = vld [vmem:[#allocation5 + $0x30] sm:$0xff]  ;;  %p2440_p7 = scmp.ne.s32.totalorder %s3178_s22, %s2439_s16  ;;  %p3253_p1 = scmp.ne.s32.totalorder %s3243_s20, 0 }
  0x6a   : > { %1855 = vmatpush3.msra.mxu0 %v389_v1  ;;  %2109 = vmatpush3.msra.mxu1 %v389_v1  ;;  %v380_v11 = vld [vmem:[#allocation5 + $0x28] sm:$0xff]  ;;  %v379_v12 = vld [vmem:[#allocation5 + $0x20] sm:$0xff]  ;;  %v378_v13 = vld [vmem:[#allocation5 + $0x18] sm:$0xff] }
  0x6b   : > { %1856 = vmatprep.subr.mxu0 %v388_v2  ;;  %2094 = vmatprep.subr.mxu1 %v388_v2  ;;  %v377_v14 = vld [vmem:[#allocation5 + $0x10] sm:$0xff]  ;;  %v376_v15 = vld [vmem:[#allocation5 + $0x8] sm:$0xff]  ;;  %v375_v16 = vld [vmem:[#allocation5] sm:$0xff]  ;;  %p2441_p12 = pnand %p2440_p7, %p3253_p1 }
  0x6c   : > { %1857 = vmatpush3.msra.mxu0 %v388_v2  ;;  %1884 = vmatprep.mubr.f32.mxu0 %v343_v4  ;;  %v344_v17 = vld [vmem:[%s2715_s12 + $0x8] sm:$0xff]  ;;  %v345_v18 = vld [vmem:[%s2715_s12 + $0x10] sm:$0xff]  ;;  %v359_v19 = vld [vmem:[%s2715_s12 + $0x80] sm:$0xff] }
  0x6d   : > { %1858 = vmatprep.subr.mxu0 %v387_v3  ;;  %2110 = vmatpush3.msra.mxu1 %v388_v2  ;;  %v360_v20 = vld [vmem:[%s2715_s12 + $0x88] sm:$0xff]  ;;  %v670_v21 = vld [vmem:[#allocation7 + $0x78] sm:$0xff]  ;;  %v361_v22 = vld [vmem:[%s2715_s12 + $0x90] sm:$0xff]  ;;  %p2442_p9 = pneg %p2441_p12 }
  0x6e   : > { %1859 = vmatpush3.msra.mxu0 %v387_v3  ;;  %2095 = vmatprep.subr.mxu1 %v387_v3  ;;  %v346_v23 = vld [vmem:[%s2715_s12 + $0x18] sm:$0xff]  ;;  %v669_v24 = vld [vmem:[#allocation7 + $0x70] sm:$0xff]  ;;  %v347_v25 = vld [vmem:[%s2715_s12 + $0x20] sm:$0xff] }
  0x6f   : > { %1860 = vmatprep.subr.mxu0 %v386_v5  ;;  %2111 = vmatpush3.msra.mxu1 %v387_v3  ;;  %v362_v26 = vld [vmem:[%s2715_s12 + $0x98] sm:$0xff]  ;;  %v668_v27 = vld [vmem:[#allocation7 + $0x68] sm:$0xff]  ;;  %v363_v28 = vld [vmem:[%s2715_s12 + $0xa0] sm:$0xff] }
  0x70   : > { %1861 = vmatpush3.msra.mxu0 %v386_v5  ;;  %2096 = vmatprep.subr.mxu1 %v386_v5  ;;  %v348_v29 = vld [vmem:[%s2715_s12 + $0x28] sm:$0xff]  ;;  %v667_v30 = vld [vmem:[#allocation7 + $0x60] sm:$0xff]  ;;  %v349_v31 = vld [vmem:[%s2715_s12 + $0x30] sm:$0xff] }
  0x71   : > { %1862 = vmatprep.subr.mxu0 %v385_v6  ;;  %2112 = vmatpush3.msra.mxu1 %v386_v5  ;;  %v364_v32 = vld [vmem:[%s2715_s12 + $0xa8] sm:$0xff]  ;;  %v666_v33 = vld [vmem:[#allocation7 + $0x58] sm:$0xff]  ;;  %v365_v34 = vld [vmem:[%s2715_s12 + $0xb0] sm:$0xff] }
  0x72   : > { %1863 = vmatpush3.msra.mxu0 %v385_v6  ;;  %2097 = vmatprep.subr.mxu1 %v385_v6  ;;  %v350_v35 = vld [vmem:[%s2715_s12 + $0x38] sm:$0xff]  ;;  %v665_v36 = vld [vmem:[#allocation7 + $0x50] sm:$0xff]  ;;  %v351_v37 = vld [vmem:[%s2715_s12 + $0x40] sm:$0xff] }
  0x73   : > { %1864 = vmatprep.subr.mxu0 %v384_v7  ;;  %2113 = vmatpush3.msra.mxu1 %v385_v6  ;;  %v366_v38 = vld [vmem:[%s2715_s12 + $0xb8] sm:$0xff]  ;;  %v664_v39 = vld [vmem:[#allocation7 + $0x48] sm:$0xff]  ;;  %v367_v40 = vld [vmem:[%s2715_s12 + $0xc0] sm:$0xff] }
  0x74   : > { %1865 = vmatpush3.msra.mxu0 %v384_v7  ;;  %2098 = vmatprep.subr.mxu1 %v384_v7  ;;  %v352_v41 = vld [vmem:[%s2715_s12 + $0x48] sm:$0xff]  ;;  %v663_v42 = vld [vmem:[#allocation7 + $0x40] sm:$0xff]  ;;  %v353_v43 = vld [vmem:[%s2715_s12 + $0x50] sm:$0xff] }
  0x75   : > { %1866 = vmatprep.subr.mxu0 %v383_v8  ;;  %2114 = vmatpush3.msra.mxu1 %v384_v7  ;;  %v368_v44 = vld [vmem:[%s2715_s12 + $0xc8] sm:$0xff]  ;;  %v662_v45 = vld [vmem:[#allocation7 + $0x38] sm:$0xff]  ;;  %v369_v46 = vld [vmem:[%s2715_s12 + $0xd0] sm:$0xff] }
  0x76   : > { %1867 = vmatpush3.msra.mxu0 %v383_v8  ;;  %2099 = vmatprep.subr.mxu1 %v383_v8  ;;  %v354_v47 = vld [vmem:[%s2715_s12 + $0x58] sm:$0xff]  ;;  %v661_v48 = vld [vmem:[#allocation7 + $0x30] sm:$0xff]  ;;  %v355_v49 = vld [vmem:[%s2715_s12 + $0x60] sm:$0xff] }
  0x77   : > { %1868 = vmatprep.subr.mxu0 %v382_v9  ;;  %2115 = vmatpush3.msra.mxu1 %v383_v8  ;;  %v370_v50 = vld [vmem:[%s2715_s12 + $0xd8] sm:$0xff]  ;;  %v660_v51 = vld [vmem:[#allocation7 + $0x28] sm:$0xff]  ;;  %v371_v52 = vld [vmem:[%s2715_s12 + $0xe0] sm:$0xff] }
  0x78   : > { %1869 = vmatpush3.msra.mxu0 %v382_v9  ;;  %2100 = vmatprep.subr.mxu1 %v382_v9  ;;  %v356_v53 = vld [vmem:[%s2715_s12 + $0x68] sm:$0xff]  ;;  %v659_v54 = vld [vmem:[#allocation7 + $0x20] sm:$0xff]  ;;  %v357_v55 = vld [vmem:[%s2715_s12 + $0x70] sm:$0xff] }
  0x79   : > { %1870 = vmatprep.subr.mxu0 %v381_v10  ;;  %2116 = vmatpush3.msra.mxu1 %v382_v9  ;;  %v372_v56 = vld [vmem:[%s2715_s12 + $0xe8] sm:$0xff]  ;;  %v658_v57 = vld [vmem:[#allocation7 + $0x18] sm:$0xff]  ;;  %v373_v58 = vld [vmem:[%s2715_s12 + $0xf0] sm:$0xff] }
  0x7a   : > { %1871 = vmatpush3.msra.mxu0 %v381_v10  ;;  %2101 = vmatprep.subr.mxu1 %v381_v10  ;;  %v358_v59 = vld [vmem:[%s2715_s12 + $0x78] sm:$0xff]  ;;  %v657_v61 = vld [vmem:[#allocation7 + $0x10] sm:$0xff]  ;;  %v656_v62 = vld [vmem:[#allocation7 + $0x8] sm:$0xff] }
  0x7b   : > { %1872 = vmatprep.subr.mxu0 %v380_v11  ;;  %2117 = vmatpush3.msra.mxu1 %v381_v10  ;;  %v374_v60 = vld [vmem:[%s2715_s12 + $0xf8] sm:$0xff]  ;;  %v655_v63 = vld [vmem:[#allocation7] sm:$0xff]  ;;  %v949_v1 = vld [vmem:[#allocation8 + $0x70] sm:$0xff]  ;;  %s2519_s12 = smov [#allocation10]  }
  0x7c   : > { %1873 = vmatpush3.msra.mxu0 %v380_v11  ;;  %2102 = vmatprep.subr.mxu1 %v380_v11  ;;  %v950_v0 = vld [vmem:[#allocation8 + $0x78] sm:$0xff]  ;;  %v948_v2 = vld [vmem:[#allocation8 + $0x68] sm:$0xff]  ;;  %v947_v3 = vld [vmem:[#allocation8 + $0x60] sm:$0xff]  ;;  %s2443_s30 = sshll.u32 %s2519_s12, 4  ;;  %s2444_s30 = int_to_ptr.vmem [resolvable:$false] %s2443_s30 }
  0x7d   : > { %1874 = vmatprep.subr.mxu0 %v379_v12  ;;  %2118 = vmatpush3.msra.mxu1 %v380_v11  ;;  %v946_v4 = vld [vmem:[#allocation8 + $0x58] sm:$0xff]  ;;  %v945_v5 = vld [vmem:[#allocation8 + $0x50] sm:$0xff]  ;;  %v944_v6 = vld [vmem:[#allocation8 + $0x48] sm:$0xff]  ;;  %s2445_s9 = scalar_lea.vmem %s2444_s30, 8192  ;;  %p2446_p13 = scmp.lt.s32.totalorder %s3178_s22, %s2444_s30 }
  0x7e   : > { %1875 = vmatpush3.msra.mxu0 %v379_v12  ;;  %2103 = vmatprep.subr.mxu1 %v379_v12  ;;  %v943_v7 = vld [vmem:[#allocation8 + $0x40] sm:$0xff]  ;;  %v942_v8 = vld [vmem:[#allocation8 + $0x38] sm:$0xff]  ;;  %v941_v9 = vld [vmem:[#allocation8 + $0x30] sm:$0xff]  ;;  %p2447_p0 = scmp.lt.s32.totalorder %s2445_s9, %s2439_s16 }
  0x7f   : > { %1876 = vmatprep.subr.mxu0 %v378_v13  ;;  %2119 = vmatpush3.msra.mxu1 %v379_v12  ;;  %v940_v10 = vld [vmem:[#allocation8 + $0x28] sm:$0xff]  ;;  %v939_v11 = vld [vmem:[#allocation8 + $0x20] sm:$0xff]  ;;  %v938_v12 = vld [vmem:[#allocation8 + $0x18] sm:$0xff] }
  0x80   : > { %1877 = vmatpush3.msra.mxu0 %v378_v13  ;;  %2104 = vmatprep.subr.mxu1 %v378_v13  ;;  %p2448_p2 = por %p2447_p0, %p2446_p13 }
  0x81   : > { %1878 = vmatprep.subr.mxu0 %v377_v14  ;;  %2120 = vmatpush3.msra.mxu1 %v378_v13  ;;  %v2764_v13 = vld [vmem:[%s3225_s2] ss:$0 sm:$0xff] }
  0x82   : > { %1879 = vmatpush3.msra.mxu0 %v377_v14  ;;  %2105 = vmatprep.subr.mxu1 %v377_v14  ;;  %p2449_p10 = pnand %p2448_p2, %p2442_p9 }
  0x83   : > { %1880 = vmatprep.subr.mxu0 %v376_v15  ;;  %2121 = vmatpush3.msra.mxu1 %v377_v14 }
  0x84   : > { %1881 = vmatpush3.msra.mxu0 %v376_v15  ;;  %2106 = vmatprep.subr.mxu1 %v376_v15 }
  0x85   : > { %1882 = vmatprep.subr.mxu0 %v375_v16  ;;  %2122 = vmatpush3.msra.mxu1 %v376_v15 }
  0x86   : > { %1883 = vmatpush3.msra.mxu0 %v375_v16  ;;  %2107 = vmatprep.subr.mxu1 %v375_v16 }
  0x87   : > { %1885 = vmatmul.mubr.f32.vlgmr.msra.gmra.mxu0 %v344_v17  ;;  %2123 = vmatpush3.msra.mxu1 %v375_v16 }
  0x88   : > { %1887 = vmatprep.mubr.f32.mxu0 %v345_v18  ;;  %1908 = vmatprep.mubr.f32.mxu1 %v359_v19 }
  0x89   : > { %1909 = vmatmul.mubr.f32.vlgmr.msra.gmra.mxu1 %v360_v20  ;;  %1932 = vmatprep.subr.mxu1 %v670_v21 }
  0x8a   : > { %1911 = vmatprep.mubr.f32.mxu1 %v361_v22  ;;  %1933 = vmatpush3.msra.mxu1 %v670_v21 }
  0x8b   : > { %1888 = vmatmul.mubr.f32.gmra.mxu0 %v346_v23  ;;  %1934 = vmatprep.subr.mxu1 %v669_v24 }
  0x8c   : > { %1890 = vmatprep.mubr.f32.mxu0 %v347_v25  ;;  %1935 = vmatpush3.msra.mxu1 %v669_v24 }
  0x8d   : > { %1912 = vmatmul.mubr.f32.gmra.mxu1 %v362_v26  ;;  %1936 = vmatprep.subr.mxu1 %v668_v27 }
  0x8e   : > { %1914 = vmatprep.mubr.f32.mxu1 %v363_v28  ;;  %1937 = vmatpush3.msra.mxu1 %v668_v27 }
  0x8f   : > { %1891 = vmatmul.mubr.f32.gmra.mxu0 %v348_v29  ;;  %1938 = vmatprep.subr.mxu1 %v667_v30 }
  0x90   : > { %1893 = vmatprep.mubr.f32.mxu0 %v349_v31  ;;  %1939 = vmatpush3.msra.mxu1 %v667_v30 }
  0x91   : > { %1915 = vmatmul.mubr.f32.gmra.mxu1 %v364_v32  ;;  %1940 = vmatprep.subr.mxu1 %v666_v33 }
  0x92   : > { %1917 = vmatprep.mubr.f32.mxu1 %v365_v34  ;;  %1941 = vmatpush3.msra.mxu1 %v666_v33 }
  0x93   : > { %1894 = vmatmul.mubr.f32.gmra.mxu0 %v350_v35  ;;  %1942 = vmatprep.subr.mxu1 %v665_v36 }
  0x94   : > { %1896 = vmatprep.mubr.f32.mxu0 %v351_v37  ;;  %1943 = vmatpush3.msra.mxu1 %v665_v36 }
  0x95   : > { %1918 = vmatmul.mubr.f32.gmra.mxu1 %v366_v38  ;;  %1944 = vmatprep.subr.mxu1 %v664_v39 }
  0x96   : > { %1920 = vmatprep.mubr.f32.mxu1 %v367_v40  ;;  %1945 = vmatpush3.msra.mxu1 %v664_v39 }
  0x97   : > { %1897 = vmatmul.mubr.f32.gmra.mxu0 %v352_v41  ;;  %1946 = vmatprep.subr.mxu1 %v663_v42 }
  0x98   : > { %1899 = vmatprep.mubr.f32.mxu0 %v353_v43  ;;  %1947 = vmatpush3.msra.mxu1 %v663_v42 }
  0x99   : > { %1921 = vmatmul.mubr.f32.gmra.mxu1 %v368_v44  ;;  %1948 = vmatprep.subr.mxu1 %v662_v45 }
  0x9a   : > { %1923 = vmatprep.mubr.f32.mxu1 %v369_v46  ;;  %1949 = vmatpush3.msra.mxu1 %v662_v45 }
  0x9b   : > { %1900 = vmatmul.mubr.f32.gmra.mxu0 %v354_v47  ;;  %1950 = vmatprep.subr.mxu1 %v661_v48 }
  0x9c   : > { %1902 = vmatprep.mubr.f32.mxu0 %v355_v49  ;;  %1951 = vmatpush3.msra.mxu1 %v661_v48 }
  0x9d   : > { %1924 = vmatmul.mubr.f32.gmra.mxu1 %v370_v50  ;;  %1952 = vmatprep.subr.mxu1 %v660_v51 }
  0x9e   : > { %1926 = vmatprep.mubr.f32.mxu1 %v371_v52  ;;  %1953 = vmatpush3.msra.mxu1 %v660_v51 }
  0x9f   : > { %1903 = vmatmul.mubr.f32.gmra.mxu0 %v356_v53  ;;  %1954 = vmatprep.subr.mxu1 %v659_v54 }
  0xa0   : > { %1905 = vmatprep.mubr.f32.mxu0 %v357_v55  ;;  %1955 = vmatpush3.msra.mxu1 %v659_v54 }
  0xa1   : > { %1927 = vmatmul.mubr.f32.gmra.mxu1 %v372_v56  ;;  %1956 = vmatprep.subr.mxu1 %v658_v57 }
  0xa2   : > { %1929 = vmatprep.mubr.f32.mxu1 %v373_v58  ;;  %1957 = vmatpush3.msra.mxu1 %v658_v57 }
  0xa3   : > { %1906 = vmatmul.mubr.f32.gmra.mxu0 %v358_v59  ;;  %1958 = vmatprep.subr.mxu1 %v657_v61 }
  0xa4   : > { %1959 = vmatpush3.msra.mxu1 %v657_v61  ;;  %2012 = vmatprep.subr.mxu0 %v950_v0 }
  0xa5   : > { %1930 = vmatmul.mubr.f32.gmra.mxu1 %v374_v60  ;;  %1960 = vmatprep.subr.mxu1 %v656_v62 }
  0xa6   : > { %1961 = vmatpush3.msra.mxu1 %v656_v62  ;;  %2013 = vmatpush3.msra.mxu0 %v950_v0 }
  0xa7   : > { %1962 = vmatprep.subr.mxu1 %v655_v63  ;;  %2014 = vmatprep.subr.mxu0 %v949_v1 }
  0xa8   : > { %1963 = vmatpush3.msra.mxu1 %v655_v63  ;;  %2015 = vmatpush3.msra.mxu0 %v949_v1 }
  0xa9   : > { %2016 = vmatprep.subr.mxu0 %v948_v2 }
  0xaa   : > { %2017 = vmatpush3.msra.mxu0 %v948_v2 }
  0xab   : > { %2018 = vmatprep.subr.mxu0 %v947_v3 }
  0xac   : > { %2019 = vmatpush3.msra.mxu0 %v947_v3 }
  0xad   : > { %2020 = vmatprep.subr.mxu0 %v946_v4 }
  0xae   : > { %2021 = vmatpush3.msra.mxu0 %v946_v4 }
  0xaf   : > { %2022 = vmatprep.subr.mxu0 %v945_v5 }
  0xb0   : > { %2023 = vmatpush3.msra.mxu0 %v945_v5 }
  0xb1   : > { %2024 = vmatprep.subr.mxu0 %v944_v6 }
  0xb2   : > { %2025 = vmatpush3.msra.mxu0 %v944_v6 }
  0xb3   : > { %2026 = vmatprep.subr.mxu0 %v943_v7 }
  0xb4   : > { %2027 = vmatpush3.msra.mxu0 %v943_v7 }
  0xb5   : > { %2028 = vmatprep.subr.mxu0 %v942_v8 }
  0xb6   : > { %2029 = vmatpush3.msra.mxu0 %v942_v8 }
  0xb7   : > { %2030 = vmatprep.subr.mxu0 %v941_v9 }
  0xb8   : > { %2031 = vmatpush3.msra.mxu0 %v941_v9 }
  0xb9   : > { %2032 = vmatprep.subr.mxu0 %v940_v10 }
  0xba   : > { %2033 = vmatpush3.msra.mxu0 %v940_v10 }
  0xbb   : > { %2034 = vmatprep.subr.mxu0 %v939_v11 }
  0xbc   : > { %2035 = vmatpush3.msra.mxu0 %v939_v11 }
  0xbd   : > { %2036 = vmatprep.subr.mxu0 %v938_v12 }
  0xbe   : > { %2037 = vmatpush3.msra.mxu0 %v938_v12 }
 0x147   : > { %v1886_v14 = vpop.f32.mrf.mxu0 }
 0x148   : > { %v470_v15 = vadd.f32 %v1886_v14, %v2764_v13 }
 0x149   : > { %v464_v16 = vpop.f32.mrf.mxu0  ;;  %v2767_v17 = vpop.f32.mrf.mxu1 }
 0x14a   : > { %v465_v18 = vadd.f32 %v2764_v13, %v464_v16  ;;  %v624_v22 = vmax.f32 %v470_v15, 0.0  ;;  %v550_v8 = vadd.f32 %v2767_v17, %v2764_v13 }
 0x14b   : > { %v1889_v19 = vpop.f32.mrf.mxu0  ;;  %v544_v20 = vpop.f32.mrf.mxu1 }
 0x14c   : > { %v623_v21 = vmax.f32 %v465_v18, 0.0  ;;  %v480_v23 = vadd.f32 %v1889_v19, %v2764_v13  ;;  %v545_v3 = vadd.f32 %v2764_v13, %v544_v20  ;;  %v640_v14 = vmax.f32 %v550_v8, 0.0 }
 0x14d   : > { %v474_v24 = vpop.f32.mrf.mxu0  ;;  %v2771_v25 = vpop.f32.mrf.mxu1 }
 0x14e   : > { %v475_v26 = vadd.f32 %v2764_v13, %v474_v24  ;;  %1964 = vmatprep.mubr.f32.mxu1 %v623_v21  ;;  %v626_v31 = vmax.f32 %v480_v23, 0.0  ;;  %v639_v10 = vmax.f32 %v545_v3, 0.0  ;;  %v560_v15 = vadd.f32 %v2771_v25, %v2764_v13 }
 0x14f   : > { %v1892_v27 = vpop.f32.mrf.mxu0  ;;  %1965 = vmatmul.mubr.f32.vlgmr.msra.gmra.mxu1 %v624_v22  ;;  %v554_v28 = vpop.f32.mrf.mxu1 }
 0x150   : > { %v625_v29 = vmax.f32 %v475_v26, 0.0  ;;  %v490_v30 = vadd.f32 %v1892_v27, %v2764_v13  ;;  %v555_v11 = vadd.f32 %v2764_v13, %v554_v28  ;;  %v642_v20 = vmax.f32 %v560_v15, 0.0 }
 0x151   : > { %v484_v32 = vpop.f32.mrf.mxu0  ;;  %v2775_v33 = vpop.f32.mrf.mxu1 }
 0x152   : > { %v485_v34 = vadd.f32 %v2764_v13, %v484_v32  ;;  %1967 = vmatprep.mubr.f32.mxu1 %v625_v29  ;;  %v628_v35 = vmax.f32 %v490_v30, 0.0  ;;  %v641_v16 = vmax.f32 %v555_v11, 0.0  ;;  %v570_v17 = vadd.f32 %v2775_v33, %v2764_v13 }
 0x153   : > { %v1895_v36 = vpop.f32.mrf.mxu0  ;;  %1968 = vmatmul.mubr.f32.gmra.mxu1 %v626_v31  ;;  %v564_v40 = vpop.f32.mrf.mxu1 }
 0x154   : > { %v627_v37 = vmax.f32 %v485_v34, 0.0  ;;  %v500_v38 = vadd.f32 %v1895_v36, %v2764_v13  ;;  %v565_v18 = vadd.f32 %v2764_v13, %v564_v40  ;;  %v644_v24 = vmax.f32 %v570_v17, 0.0 }
 0x155   : > { %v494_v39 = vpop.f32.mrf.mxu0  ;;  %v1919_v47 = vpop.f32.mrf.mxu1 }
 0x156   : > { %v495_v41 = vadd.f32 %v2764_v13, %v494_v39  ;;  %1970 = vmatprep.mubr.f32.mxu1 %v627_v37  ;;  %v630_v42 = vmax.f32 %v500_v38, 0.0  ;;  %v643_v21 = vmax.f32 %v565_v18, 0.0  ;;  %v580_v26 = vadd.f32 %v1919_v47, %v2764_v13  ;;  %v937_v47 = vld [vmem:[#allocation8 + $0x10] sm:$0xff] }
 0x157   : > { %v1898_v43 = vpop.f32.mrf.mxu0  ;;  %1971 = vmatmul.mubr.f32.gmra.mxu1 %v628_v35  ;;  %v574_v54 = vpop.f32.mrf.mxu1  ;;  %2038 = vmatprep.subr.mxu0 %v937_v47 }
 0x158   : > { %v629_v44 = vmax.f32 %v495_v41, 0.0  ;;  %v510_v45 = vadd.f32 %v1898_v43, %v2764_v13  ;;  %v575_v22 = vadd.f32 %v2764_v13, %v574_v54  ;;  %v646_v29 = vmax.f32 %v580_v26, 0.0  ;;  %2039 = vmatpush3.msra.mxu0 %v937_v47 }
 0x159   : > { %v504_v46 = vpop.f32.mrf.mxu0  ;;  %v1922_v61 = vpop.f32.mrf.mxu1 }
 0x15a   : > { %v505_v48 = vadd.f32 %v2764_v13, %v504_v46  ;;  %1973 = vmatprep.mubr.f32.mxu1 %v629_v44  ;;  %v632_v49 = vmax.f32 %v510_v45, 0.0  ;;  %v645_v25 = vmax.f32 %v575_v22, 0.0  ;;  %v590_v30 = vadd.f32 %v1922_v61, %v2764_v13 }
 0x15b   : > { %v1901_v50 = vpop.f32.mrf.mxu0  ;;  %1974 = vmatmul.mubr.f32.gmra.mxu1 %v630_v42  ;;  %v584_v5 = vpop.f32.mrf.mxu1 }
 0x15c   : > { %v631_v51 = vmax.f32 %v505_v48, 0.0  ;;  %v520_v52 = vadd.f32 %v1901_v50, %v2764_v13  ;;  %v585_v27 = vadd.f32 %v2764_v13, %v584_v5  ;;  %v648_v34 = vmax.f32 %v590_v30, 0.0  ;;  %v936_v48 = vld [vmem:[#allocation8 + $0x8] sm:$0xff] }
 0x15d   : > { %v514_v53 = vpop.f32.mrf.mxu0  ;;  %v1925_v12 = vpop.f32.mrf.mxu1  ;;  %2040 = vmatprep.subr.mxu0 %v936_v48 }
 0x15e   : > { %v515_v55 = vadd.f32 %v2764_v13, %v514_v53  ;;  %1976 = vmatprep.mubr.f32.mxu1 %v631_v51  ;;  %v634_v56 = vmax.f32 %v520_v52, 0.0  ;;  %v647_v31 = vmax.f32 %v585_v27, 0.0  ;;  %v600_v35 = vadd.f32 %v1925_v12, %v2764_v13  ;;  %2041 = vmatpush3.msra.mxu0 %v936_v48 }
 0x15f   : > { %v1904_v57 = vpop.f32.mrf.mxu0  ;;  %1977 = vmatmul.mubr.f32.gmra.mxu1 %v632_v49  ;;  %v594_v19 = vpop.f32.mrf.mxu1  ;;  %v935_v49 = vld [vmem:[#allocation8] sm:$0xff] }
 0x160   : > { %v633_v58 = vmax.f32 %v515_v55, 0.0  ;;  %v530_v59 = vadd.f32 %v1904_v57, %v2764_v13  ;;  %v595_v32 = vadd.f32 %v2764_v13, %v594_v19  ;;  %v650_v39 = vmax.f32 %v600_v35, 0.0  ;;  %2042 = vmatprep.subr.mxu0 %v935_v49 }
 0x161   : > { %v524_v60 = vpop.f32.mrf.mxu0  ;;  %v1928_v23 = vpop.f32.mrf.mxu1  ;;  %2043 = vmatpush3.msra.mxu0 %v935_v49 }
 0x162   : > { %v525_v62 = vadd.f32 %v2764_v13, %v524_v60  ;;  %1979 = vmatprep.mubr.f32.mxu1 %v633_v58  ;;  %v636_v63 = vmax.f32 %v530_v59, 0.0  ;;  %v649_v36 = vmax.f32 %v595_v32, 0.0  ;;  %v610_v40 = vadd.f32 %v1928_v23, %v2764_v13 }
 0x163   : > { %v1907_v0 = vpop.f32.mrf.mxu0  ;;  %1980 = vmatmul.mubr.f32.gmra.mxu1 %v634_v56  ;;  %v604_v28 = vpop.f32.mrf.mxu1 }
 0x164   : > { %v635_v1 = vmax.f32 %v525_v62, 0.0  ;;  %v540_v2 = vadd.f32 %v1907_v0, %v2764_v13  ;;  %v605_v37 = vadd.f32 %v2764_v13, %v604_v28  ;;  %v652_v43 = vmax.f32 %v610_v40, 0.0 }
 0x165   : > { %v534_v4 = vpop.f32.mrf.mxu0  ;;  %v1931_v33 = vpop.f32.mrf.mxu1 }
 0x166   : > { %v535_v6 = vadd.f32 %v2764_v13, %v534_v4  ;;  %1982 = vmatprep.mubr.f32.mxu1 %v635_v1  ;;  %v638_v7 = vmax.f32 %v540_v2, 0.0  ;;  %v651_v41 = vmax.f32 %v605_v37, 0.0  ;;  %v620_v44 = vadd.f32 %v1931_v33, %v2764_v13 }
 0x167   : > { %1983 = vmatmul.mubr.f32.gmra.mxu1 %v636_v63  ;;  %v614_v38 = vpop.f32.mrf.mxu1 }
 0x168   : > { %v637_v9 = vmax.f32 %v535_v6, 0.0  ;;  %v615_v42 = vadd.f32 %v2764_v13, %v614_v38  ;;  %v654_v46 = vmax.f32 %v620_v44, 0.0  ;;  %v2810_v13 = vld [vmem:[%s3227_s4] ss:$0 sm:$0xff] }
 0x16a   : > { %1985 = vmatprep.mubr.f32.mxu1 %v637_v9  ;;  %v653_v45 = vmax.f32 %v615_v42, 0.0 }
 0x16b   : > { %1986 = vmatmul.mubr.f32.gmra.mxu1 %v638_v7 }
 0x16c   : > { %1988 = vmatprep.mubr.f32.mxu1 %v639_v10 }
 0x16f   : > { %1989 = vmatmul.mubr.f32.gmra.mxu1 %v640_v14 }
 0x170   : > { %1991 = vmatprep.mubr.f32.mxu1 %v641_v16 }
 0x173   : > { %1992 = vmatmul.mubr.f32.gmra.mxu1 %v642_v20 }
 0x174   : > { %1994 = vmatprep.mubr.f32.mxu1 %v643_v21 }
 0x177   : > { %1995 = vmatmul.mubr.f32.gmra.mxu1 %v644_v24 }
 0x178   : > { %1997 = vmatprep.mubr.f32.mxu1 %v645_v25 }
 0x17b   : > { %1998 = vmatmul.mubr.f32.gmra.mxu1 %v646_v29 }
 0x17c   : > { %2000 = vmatprep.mubr.f32.mxu1 %v647_v31 }
 0x17f   : > { %2001 = vmatmul.mubr.f32.gmra.mxu1 %v648_v34 }
 0x180   : > { %2003 = vmatprep.mubr.f32.mxu1 %v649_v36 }
 0x183   : > { %2004 = vmatmul.mubr.f32.gmra.mxu1 %v650_v39 }
 0x184   : > { %2006 = vmatprep.mubr.f32.mxu1 %v651_v41 }
 0x187   : > { %2007 = vmatmul.mubr.f32.gmra.mxu1 %v652_v43 }
 0x188   : > { %2009 = vmatprep.mubr.f32.mxu1 %v653_v45 }
 0x18b   : > { %2010 = vmatmul.mubr.f32.gmra.mxu1 %v654_v46 }
 0x20f   : > { %v1966_v50 = vpop.f32.mrf.mxu1 }
 0x210   : > { %v750_v51 = vadd.f32 %v1966_v50, %v2810_v13 }
 0x211   : > { %v744_v52 = vpop.f32.mrf.mxu1 }
 0x212   : > { %v745_v53 = vadd.f32 %v2810_v13, %v744_v52  ;;  %v904_v56 = vmax.f32 %v750_v51, 0.0 }
 0x213   : > { %v1969_v54 = vpop.f32.mrf.mxu1 }
 0x214   : > { %v903_v55 = vmax.f32 %v745_v53, 0.0  ;;  %v760_v57 = vadd.f32 %v1969_v54, %v2810_v13 }
 0x215   : > { %v754_v58 = vpop.f32.mrf.mxu1 }
 0x216   : > { %v755_v59 = vadd.f32 %v2810_v13, %v754_v58  ;;  %2044 = vmatprep.mubr.f32.mxu0 %v903_v55  ;;  %v906_v62 = vmax.f32 %v760_v57, 0.0 }
 0x217   : > { %v1972_v60 = vpop.f32.mrf.mxu1  ;;  %2045 = vmatmul.mubr.f32.vlgmr.msra.gmra.mxu0 %v904_v56 }
 0x218   : > { %v905_v61 = vmax.f32 %v755_v59, 0.0  ;;  %v770_v63 = vadd.f32 %v1972_v60, %v2810_v13 }
 0x219   : > { %v764_v0 = vpop.f32.mrf.mxu1 }
 0x21a   : > { %v765_v1 = vadd.f32 %v2810_v13, %v764_v0  ;;  %2047 = vmatprep.mubr.f32.mxu0 %v905_v61  ;;  %v908_v4 = vmax.f32 %v770_v63, 0.0 }
 0x21b   : > { %v1975_v2 = vpop.f32.mrf.mxu1  ;;  %2048 = vmatmul.mubr.f32.gmra.mxu0 %v906_v62 }
 0x21c   : > { %v907_v3 = vmax.f32 %v765_v1, 0.0  ;;  %v780_v5 = vadd.f32 %v1975_v2, %v2810_v13 }
 0x21d   : > { %v774_v6 = vpop.f32.mrf.mxu1 }
 0x21e   : > { %v775_v7 = vadd.f32 %v2810_v13, %v774_v6  ;;  %2050 = vmatprep.mubr.f32.mxu0 %v907_v3  ;;  %v910_v10 = vmax.f32 %v780_v5, 0.0 }
 0x21f   : > { %v1978_v8 = vpop.f32.mrf.mxu1  ;;  %2051 = vmatmul.mubr.f32.gmra.mxu0 %v908_v4 }
 0x220   : > { %v909_v9 = vmax.f32 %v775_v7, 0.0  ;;  %v790_v11 = vadd.f32 %v1978_v8, %v2810_v13 }
 0x221   : > { %v784_v12 = vpop.f32.mrf.mxu1 }
 0x222   : > { %v785_v14 = vadd.f32 %v2810_v13, %v784_v12  ;;  %2053 = vmatprep.mubr.f32.mxu0 %v909_v9  ;;  %v912_v18 = vmax.f32 %v790_v11, 0.0 }
 0x223   : > { %v1981_v15 = vpop.f32.mrf.mxu1  ;;  %2054 = vmatmul.mubr.f32.gmra.mxu0 %v910_v10 }
 0x224   : > { %v911_v16 = vmax.f32 %v785_v14, 0.0  ;;  %v800_v19 = vadd.f32 %v1981_v15, %v2810_v13 }
 0x225   : > { %v794_v20 = vpop.f32.mrf.mxu1 }
 0x226   : > { %v795_v17 = vadd.f32 %v2810_v13, %v794_v20  ;;  %2056 = vmatprep.mubr.f32.mxu0 %v911_v16  ;;  %v914_v23 = vmax.f32 %v800_v19, 0.0 }
 0x227   : > { %v1984_v21 = vpop.f32.mrf.mxu1  ;;  %2057 = vmatmul.mubr.f32.gmra.mxu0 %v912_v18 }
 0x228   : > { %v913_v22 = vmax.f32 %v795_v17, 0.0  ;;  %v810_v24 = vadd.f32 %v1984_v21, %v2810_v13  ;;  %v2847_v17 = vld [vmem:[%s3229_s6] ss:$0 sm:$0xff] }
 0x229   : > { %v804_v26 = vpop.f32.mrf.mxu1 }
 0x22a   : > { %v805_v25 = vadd.f32 %v2810_v13, %v804_v26  ;;  %2059 = vmatprep.mubr.f32.mxu0 %v913_v22  ;;  %v916_v29 = vmax.f32 %v810_v24, 0.0 }
 0x22b   : > { %v1987_v27 = vpop.f32.mrf.mxu1  ;;  %2060 = vmatmul.mubr.f32.gmra.mxu0 %v914_v23 }
 0x22c   : > { %v915_v28 = vmax.f32 %v805_v25, 0.0  ;;  %v820_v30 = vadd.f32 %v1987_v27, %v2810_v13 }
 0x22d   : > { %v814_v31 = vpop.f32.mrf.mxu1 }
 0x22e   : > { %v815_v32 = vadd.f32 %v2810_v13, %v814_v31  ;;  %2062 = vmatprep.mubr.f32.mxu0 %v915_v28  ;;  %v918_v35 = vmax.f32 %v820_v30, 0.0 }
 0x22f   : > { %v1990_v33 = vpop.f32.mrf.mxu1  ;;  %2063 = vmatmul.mubr.f32.gmra.mxu0 %v916_v29 }
 0x230   : > { %v917_v34 = vmax.f32 %v815_v32, 0.0  ;;  %v830_v36 = vadd.f32 %v1990_v33, %v2810_v13 }
 0x231   : > { %v824_v37 = vpop.f32.mrf.mxu1 }
 0x232   : > { %v825_v38 = vadd.f32 %v2810_v13, %v824_v37  ;;  %2065 = vmatprep.mubr.f32.mxu0 %v917_v34  ;;  %v920_v41 = vmax.f32 %v830_v36, 0.0 }
 0x233   : > { %v1993_v39 = vpop.f32.mrf.mxu1  ;;  %2066 = vmatmul.mubr.f32.gmra.mxu0 %v918_v35 }
 0x234   : > { %v919_v40 = vmax.f32 %v825_v38, 0.0  ;;  %v840_v42 = vadd.f32 %v1993_v39, %v2810_v13 }
 0x235   : > { %v834_v43 = vpop.f32.mrf.mxu1 }
 0x236   : > { %v835_v44 = vadd.f32 %v2810_v13, %v834_v43  ;;  %2068 = vmatprep.mubr.f32.mxu0 %v919_v40  ;;  %v922_v47 = vmax.f32 %v840_v42, 0.0 }
 0x237   : > { %v1996_v45 = vpop.f32.mrf.mxu1  ;;  %2069 = vmatmul.mubr.f32.gmra.mxu0 %v920_v41 }
 0x238   : > { %v921_v46 = vmax.f32 %v835_v44, 0.0  ;;  %v850_v48 = vadd.f32 %v1996_v45, %v2810_v13 }
 0x239   : > { %v844_v49 = vpop.f32.mrf.mxu1 }
 0x23a   : > { %v845_v50 = vadd.f32 %v2810_v13, %v844_v49  ;;  %2071 = vmatprep.mubr.f32.mxu0 %v921_v46  ;;  %v924_v53 = vmax.f32 %v850_v48, 0.0 }
 0x23b   : > { %v1999_v51 = vpop.f32.mrf.mxu1  ;;  %2072 = vmatmul.mubr.f32.gmra.mxu0 %v922_v47 }
 0x23c   : > { %v923_v52 = vmax.f32 %v845_v50, 0.0  ;;  %v860_v54 = vadd.f32 %v1999_v51, %v2810_v13 }
 0x23d   : > { %v854_v55 = vpop.f32.mrf.mxu1 }
 0x23e   : > { %v855_v56 = vadd.f32 %v2810_v13, %v854_v55  ;;  %2074 = vmatprep.mubr.f32.mxu0 %v923_v52  ;;  %v926_v59 = vmax.f32 %v860_v54, 0.0 }
 0x23f   : > { %v2002_v57 = vpop.f32.mrf.mxu1  ;;  %2075 = vmatmul.mubr.f32.gmra.mxu0 %v924_v53 }
 0x240   : > { %v925_v58 = vmax.f32 %v855_v56, 0.0  ;;  %v870_v60 = vadd.f32 %v2002_v57, %v2810_v13 }
 0x241   : > { %v864_v61 = vpop.f32.mrf.mxu1 }
 0x242   : > { %v865_v62 = vadd.f32 %v2810_v13, %v864_v61  ;;  %2077 = vmatprep.mubr.f32.mxu0 %v925_v58  ;;  %v928_v1 = vmax.f32 %v870_v60, 0.0 }
 0x243   : > { %v2005_v63 = vpop.f32.mrf.mxu1  ;;  %2078 = vmatmul.mubr.f32.gmra.mxu0 %v926_v59 }
 0x244   : > { %v927_v0 = vmax.f32 %v865_v62, 0.0  ;;  %v880_v2 = vadd.f32 %v2005_v63, %v2810_v13 }
 0x245   : > { %v874_v3 = vpop.f32.mrf.mxu1 }
 0x246   : > { %v875_v4 = vadd.f32 %v2810_v13, %v874_v3  ;;  %2080 = vmatprep.mubr.f32.mxu0 %v927_v0  ;;  %v930_v7 = vmax.f32 %v880_v2, 0.0 }
 0x247   : > { %v2008_v5 = vpop.f32.mrf.mxu1  ;;  %2081 = vmatmul.mubr.f32.gmra.mxu0 %v928_v1 }
 0x248   : > { %v929_v6 = vmax.f32 %v875_v4, 0.0  ;;  %v890_v8 = vadd.f32 %v2008_v5, %v2810_v13 }
 0x249   : > { %v884_v9 = vpop.f32.mrf.mxu1 }
 0x24a   : > { %v885_v10 = vadd.f32 %v2810_v13, %v884_v9  ;;  %2083 = vmatprep.mubr.f32.mxu0 %v929_v6  ;;  %v932_v14 = vmax.f32 %v890_v8, 0.0 }
 0x24b   : > { %v2011_v11 = vpop.f32.mrf.mxu1  ;;  %2084 = vmatmul.mubr.f32.gmra.mxu0 %v930_v7 }
 0x24c   : > { %v931_v12 = vmax.f32 %v885_v10, 0.0  ;;  %v900_v15 = vadd.f32 %v2011_v11, %v2810_v13 }
 0x24d   : > { %v894_v16 = vpop.f32.mrf.mxu1 }
 0x24e   : > { %v895_v18 = vadd.f32 %v2810_v13, %v894_v16  ;;  %2086 = vmatprep.mubr.f32.mxu0 %v931_v12  ;;  %v934_v20 = vmax.f32 %v900_v15, 0.0 }
 0x24f   : > { %2087 = vmatmul.mubr.f32.gmra.mxu0 %v932_v14 }
 0x250   : > { %v933_v19 = vmax.f32 %v895_v18, 0.0 }
 0x252   : > { %2089 = vmatprep.mubr.f32.mxu0 %v933_v19 }
 0x253   : > { %2090 = vmatmul.mubr.f32.gmra.mxu0 %v934_v20 }
 0x2d7   : > { %v2046_v21 = vpop.f32.mrf.mxu0 }
 0x2d8   : > { %v2850_v22 = vadd.f32 %v2046_v21, %v2847_v17 }
 0x2d9   : > { %v1024_v23 = vpop.f32.mrf.mxu0 }
 0x2da   : > { %1185 = vmax.xlane.f32.xlu0 %v2850_v22  ;;  %v2854_v13 = vadd.f32 %v2847_v17, %v1024_v23 }
 0x2db   : > { %v2049_v24 = vpop.f32.mrf.mxu0 }
 0x2dc   : > { %v2857_v26 = vadd.f32 %v2049_v24, %v2847_v17 }
 0x2dd   : > { %v1034_v25 = vpop.f32.mrf.mxu0 }
 0x2de   : > { %1189 = vmax.xlane.f32.xlu1 %v2857_v26  ;;  %1183 = vmax.xlane.f32.xlu0 %v2854_v13  ;;  %v2862_v28 = vadd.f32 %v2847_v17, %v1034_v25 }
 0x2df   : > { %v2052_v27 = vpop.f32.mrf.mxu0 }
 0x2e0   : > { %v2869_v32 = vadd.f32 %v2052_v27, %v2847_v17 }
 0x2e1   : > { %v1044_v29 = vpop.f32.mrf.mxu0 }
 0x2e2   : > { %v2865_v30 = vadd.f32 %v2847_v17, %v1044_v29  ;;  %1187 = vmax.xlane.f32.xlu1 %v2862_v28 }
 0x2e3   : > { %v2055_v31 = vpop.f32.mrf.mxu0 }
 0x2e4   : > { %1191 = vmax.xlane.f32.xlu0 %v2865_v30  ;;  %v2877_v36 = vadd.f32 %v2055_v31, %v2847_v17 }
 0x2e5   : > { %v1054_v33 = vpop.f32.mrf.mxu0 }
 0x2e6   : > { %v2873_v34 = vadd.f32 %v2847_v17, %v1054_v33  ;;  %1193 = vmax.xlane.f32.xlu1 %v2869_v32 }
 0x2e7   : > { %v2058_v35 = vpop.f32.mrf.mxu0 }
 0x2e8   : > { %1195 = vmax.xlane.f32.xlu0 %v2873_v34  ;;  %v2885_v40 = vadd.f32 %v2058_v35, %v2847_v17 }
 0x2e9   : > { %v1064_v37 = vpop.f32.mrf.mxu0 }
 0x2ea   : > { %v2881_v38 = vadd.f32 %v2847_v17, %v1064_v37  ;;  %1197 = vmax.xlane.f32.xlu1 %v2877_v36 }
 0x2eb   : > { %v2061_v39 = vpop.f32.mrf.mxu0 }
 0x2ec   : > { %1199 = vmax.xlane.f32.xlu0 %v2881_v38  ;;  %v2893_v44 = vadd.f32 %v2061_v39, %v2847_v17 }
 0x2ed   : > { %v1074_v41 = vpop.f32.mrf.mxu0 }
 0x2ee   : > { %v2889_v42 = vadd.f32 %v2847_v17, %v1074_v41  ;;  %1201 = vmax.xlane.f32.xlu1 %v2885_v40 }
 0x2ef   : > { %v2064_v43 = vpop.f32.mrf.mxu0 }
 0x2f0   : > { %1203 = vmax.xlane.f32.xlu0 %v2889_v42  ;;  %v2901_v48 = vadd.f32 %v2064_v43, %v2847_v17 }
 0x2f1   : > { %v1084_v45 = vpop.f32.mrf.mxu0 }
 0x2f2   : > { %v2897_v46 = vadd.f32 %v2847_v17, %v1084_v45  ;;  %1205 = vmax.xlane.f32.xlu1 %v2893_v44 }
 0x2f3   : > { %v2067_v47 = vpop.f32.mrf.mxu0 }
 0x2f4   : > { %1207 = vmax.xlane.f32.xlu0 %v2897_v46  ;;  %v2909_v52 = vadd.f32 %v2067_v47, %v2847_v17 }
 0x2f5   : > { %v1094_v49 = vpop.f32.mrf.mxu0 }
 0x2f6   : > { %v2905_v50 = vadd.f32 %v2847_v17, %v1094_v49  ;;  %1209 = vmax.xlane.f32.xlu1 %v2901_v48 }
 0x2f7   : > { %v2070_v51 = vpop.f32.mrf.mxu0 }
 0x2f8   : > { %1211 = vmax.xlane.f32.xlu0 %v2905_v50  ;;  %v2917_v56 = vadd.f32 %v2070_v51, %v2847_v17 }
 0x2f9   : > { %v1104_v53 = vpop.f32.mrf.mxu0 }
 0x2fa   : > { %v2913_v54 = vadd.f32 %v2847_v17, %v1104_v53  ;;  %1213 = vmax.xlane.f32.xlu1 %v2909_v52 }
 0x2fb   : > { %v2073_v55 = vpop.f32.mrf.mxu0 }
 0x2fc   : > { %1215 = vmax.xlane.f32.xlu0 %v2913_v54  ;;  %v2925_v60 = vadd.f32 %v2073_v55, %v2847_v17 }
 0x2fd   : > { %v1114_v57 = vpop.f32.mrf.mxu0 }
 0x2fe   : > { %v2921_v58 = vadd.f32 %v2847_v17, %v1114_v57  ;;  %1217 = vmax.xlane.f32.xlu1 %v2917_v56 }
 0x2ff   : > { %v2076_v59 = vpop.f32.mrf.mxu0 }
 0x300   : > { %1219 = vmax.xlane.f32.xlu0 %v2921_v58  ;;  %v2933_v0 = vadd.f32 %v2076_v59, %v2847_v17 }
 0x301   : > { %v1124_v61 = vpop.f32.mrf.mxu0 }
 0x302   : > { %v2929_v62 = vadd.f32 %v2847_v17, %v1124_v61  ;;  %1221 = vmax.xlane.f32.xlu1 %v2925_v60 }
 0x303   : > { %v2079_v63 = vpop.f32.mrf.mxu0 }
 0x304   : > { %1223 = vmax.xlane.f32.xlu0 %v2929_v62  ;;  %v2941_v4 = vadd.f32 %v2079_v63, %v2847_v17 }
 0x305   : > { %v1134_v1 = vpop.f32.mrf.mxu0 }
 0x306   : > { %v2937_v2 = vadd.f32 %v2847_v17, %v1134_v1  ;;  %1225 = vmax.xlane.f32.xlu1 %v2933_v0 }
 0x307   : > { %v2082_v3 = vpop.f32.mrf.mxu0 }
 0x308   : > { %1227 = vmax.xlane.f32.xlu0 %v2937_v2  ;;  %v2949_v8 = vadd.f32 %v2082_v3, %v2847_v17 }
 0x309   : > { %v1144_v5 = vpop.f32.mrf.mxu0 }
 0x30a   : > { %v2945_v6 = vadd.f32 %v2847_v17, %v1144_v5  ;;  %1229 = vmax.xlane.f32.xlu1 %v2941_v4 }
 0x30b   : > { %v2085_v7 = vpop.f32.mrf.mxu0 }
 0x30c   : > { %1231 = vmax.xlane.f32.xlu0 %v2945_v6  ;;  %v2957_v12 = vadd.f32 %v2085_v7, %v2847_v17 }
 0x30d   : > { %v1154_v9 = vpop.f32.mrf.mxu0 }
 0x30e   : > { %v2953_v10 = vadd.f32 %v2847_v17, %v1154_v9  ;;  %1233 = vmax.xlane.f32.xlu1 %v2949_v8 }
 0x30f   : > { %v2088_v11 = vpop.f32.mrf.mxu0 }
 0x310   : > { %1235 = vmax.xlane.f32.xlu0 %v2953_v10  ;;  %v2965_v18 = vadd.f32 %v2088_v11, %v2847_v17 }
 0x311   : > { %v1164_v14 = vpop.f32.mrf.mxu0 }
 0x312   : > { %v2961_v15 = vadd.f32 %v2847_v17, %v1164_v14  ;;  %1237 = vmax.xlane.f32.xlu1 %v2957_v12 }
 0x313   : > { %v2091_v16 = vpop.f32.mrf.mxu0 }
 0x314   : > { %1239 = vmax.xlane.f32.xlu0 %v2961_v15  ;;  %v2973_v21 = vadd.f32 %v2091_v16, %v2847_v17 }
 0x315   : > { %v1174_v19 = vpop.f32.mrf.mxu0 }
 0x316   : > { %v2969_v20 = vadd.f32 %v2847_v17, %v1174_v19  ;;  %1241 = vmax.xlane.f32.xlu1 %v2965_v18 }
 0x318   : > { %1243 = vmax.xlane.f32.xlu0 %v2969_v20 }
 0x31a   : > { %1245 = vmax.xlane.f32.xlu1 %v2973_v21 }
 0x363   : > { %v1186_v23 = vpop.xlane.xlu0 %1185 }
 0x364   : > { %v1248_v24 = vsub.f32 %v2850_v22, %v1186_v23 }
 0x366   : > { %v1281_v25 = vmul.f32 1.442695, %v1248_v24 }
 0x367   : > { %v1190_v27 = vpop.xlane.xlu1 %1189  ;;  %v1184_v29 = vpop.xlane.xlu0 %1183 }
 0x368   : > { %2205 = vpow2.f32 %v1281_v25  ;;  %v1250_v31 = vsub.f32 %v2857_v26, %v1190_v27  ;;  %v1247_v33 = vsub.f32 %v2854_v13, %v1184_v29 }
 0x36a   : > { %v1285_v35 = vmul.f32 1.442695, %v1250_v31  ;;  %v1279_v37 = vmul.f32 1.442695, %v1247_v33 }
 0x36b   : > { %v1188_v39 = vpop.xlane.xlu1 %1187 }
 0x36c   : > { %2207 = vpow2.f32 %v1285_v35  ;;  %v1249_v17 = vsub.f32 %v2862_v28, %v1188_v39 }
 0x36d   : > { %2209 = vpow2.f32 %v1279_v37  ;;  %v1192_v41 = vpop.xlane.xlu0 %1191 }
 0x36e   : > { %v1283_v43 = vmul.f32 1.442695, %v1249_v17  ;;  %v1251_v45 = vsub.f32 %v2865_v30, %v1192_v41 }
 0x36f   : > { %v1194_v22 = vpop.xlane.xlu1 %1193 }
 0x370   : > { %2211 = vpow2.f32 %v1283_v43  ;;  %v1252_v47 = vsub.f32 %v2869_v32, %v1194_v22  ;;  %v1287_v49 = vmul.f32 1.442695, %v1251_v45 }
 0x371   : > { %v1196_v51 = vpop.xlane.xlu0 %1195 }
 0x372   : > { %v1289_v26 = vmul.f32 1.442695, %v1252_v47  ;;  %v1253_v13 = vsub.f32 %v2873_v34, %v1196_v51 }
 0x373   : > { %v1198_v53 = vpop.xlane.xlu1 %1197 }
 0x374   : > { %2213 = vpow2.f32 %v1289_v26  ;;  %v1254_v55 = vsub.f32 %v2877_v36, %v1198_v53  ;;  %v1291_v28 = vmul.f32 1.442695, %v1253_v13 }
 0x375   : > { %v2985_v57 = vpop.eup %2205  ;;  %2215 = vpow2.f32 %v1287_v49  ;;  %v1200_v59 = vpop.xlane.xlu0 %1199 }
 0x376   : > { %v1293_v61 = vmul.f32 1.442695, %v1254_v55  ;;  %v1255_v30 = vsub.f32 %v2881_v38, %v1200_v59  ;;  %1345 = vadd.xlane.f32.xlu1 %v2985_v57 }
 0x377   : > { %v1202_v32 = vpop.xlane.xlu1 %1201 }
 0x378   : > { %2217 = vpow2.f32 %v1293_v61  ;;  %v1256_v63 = vsub.f32 %v2885_v40, %v1202_v32  ;;  %v1295_v34 = vmul.f32 1.442695, %v1255_v30 }
 0x379   : > { %v2990_v1 = vpop.eup %2207  ;;  %2219 = vpow2.f32 %v1291_v28  ;;  %v1204_v3 = vpop.xlane.xlu0 %1203 }
 0x37a   : > { %v2992_v36 = vpop.eup %2209  ;;  %v1297_v5 = vmul.f32 1.442695, %v1256_v63  ;;  %v1257_v7 = vsub.f32 %v2889_v42, %v1204_v3  ;;  %1349 = vadd.xlane.f32.xlu1 %v2990_v1 }
 0x37b   : > { %1343 = vadd.xlane.f32.xlu0 %v2992_v36  ;;  %v1206_v38 = vpop.xlane.xlu1 %1205 }
 0x37c   : > { %2221 = vpow2.f32 %v1297_v5  ;;  %v1258_v9 = vsub.f32 %v2893_v44, %v1206_v38  ;;  %v1299_v40 = vmul.f32 1.442695, %v1257_v7 }
 0x37d   : > { %v2998_v11 = vpop.eup %2211  ;;  %2223 = vpow2.f32 %v1295_v34  ;;  %v1208_v14 = vpop.xlane.xlu0 %1207 }
 0x37e   : > { %v1301_v16 = vmul.f32 1.442695, %v1258_v9  ;;  %v1259_v19 = vsub.f32 %v2897_v46, %v1208_v14 }
 0x37f   : > { %1347 = vadd.xlane.f32.xlu0 %v2998_v11  ;;  %v1210_v23 = vpop.xlane.xlu1 %1209 }
 0x380   : > { %2225 = vpow2.f32 %v1301_v16  ;;  %v1260_v42 = vsub.f32 %v2901_v48, %v1210_v23  ;;  %v1303_v25 = vmul.f32 1.442695, %v1259_v19 }
 0x381   : > { %v3003_v24 = vpop.eup %2213  ;;  %2227 = vpow2.f32 %v1299_v40  ;;  %v1212_v27 = vpop.xlane.xlu0 %1211 }
 0x382   : > { %v3005_v44 = vpop.eup %2215  ;;  %v1305_v29 = vmul.f32 1.442695, %v1260_v42  ;;  %v1261_v31 = vsub.f32 %v2905_v50, %v1212_v27  ;;  %1353 = vadd.xlane.f32.xlu1 %v3003_v24 }
 0x383   : > { %1351 = vadd.xlane.f32.xlu0 %v3005_v44  ;;  %v1214_v46 = vpop.xlane.xlu1 %1213 }
 0x384   : > { %2229 = vpow2.f32 %v1305_v29  ;;  %v1262_v33 = vsub.f32 %v2909_v52, %v1214_v46  ;;  %v1307_v48 = vmul.f32 1.442695, %v1261_v31 }
 0x385   : > { %v3011_v35 = vpop.eup %2217  ;;  %2231 = vpow2.f32 %v1303_v25  ;;  %v1216_v37 = vpop.xlane.xlu0 %1215 }
 0x386   : > { %v3013_v39 = vpop.eup %2219  ;;  %v1309_v17 = vmul.f32 1.442695, %v1262_v33  ;;  %v1263_v41 = vsub.f32 %v2913_v54, %v1216_v37  ;;  %1357 = vadd.xlane.f32.xlu1 %v3011_v35 }
 0x387   : > { %1355 = vadd.xlane.f32.xlu0 %v3013_v39  ;;  %v1218_v50 = vpop.xlane.xlu1 %1217 }
 0x388   : > { %2233 = vpow2.f32 %v1309_v17  ;;  %v1264_v43 = vsub.f32 %v2917_v56, %v1218_v50  ;;  %v1311_v52 = vmul.f32 1.442695, %v1263_v41 }
 0x389   : > { %v3019_v45 = vpop.eup %2221  ;;  %2235 = vpow2.f32 %v1307_v48  ;;  %v1220_v22 = vpop.xlane.xlu0 %1219 }
 0x38a   : > { %v3021_v47 = vpop.eup %2223  ;;  %v1313_v49 = vmul.f32 1.442695, %v1264_v43  ;;  %v1265_v51 = vsub.f32 %v2921_v58, %v1220_v22  ;;  %1361 = vadd.xlane.f32.xlu1 %v3019_v45 }
 0x38b   : > { %1359 = vadd.xlane.f32.xlu0 %v3021_v47  ;;  %v1222_v54 = vpop.xlane.xlu1 %1221 }
 0x38c   : > { %2237 = vpow2.f32 %v1313_v49  ;;  %v1266_v26 = vsub.f32 %v2925_v60, %v1222_v54  ;;  %v1315_v56 = vmul.f32 1.442695, %v1265_v51 }
 0x38d   : > { %v3027_v13 = vpop.eup %2225  ;;  %2239 = vpow2.f32 %v1311_v52  ;;  %v1224_v53 = vpop.xlane.xlu0 %1223 }
 0x38e   : > { %v3029_v55 = vpop.eup %2227  ;;  %v1317_v28 = vmul.f32 1.442695, %v1266_v26  ;;  %v1267_v59 = vsub.f32 %v2929_v62, %v1224_v53  ;;  %1365 = vadd.xlane.f32.xlu1 %v3027_v13 }
 0x38f   : > { %1363 = vadd.xlane.f32.xlu0 %v3029_v55  ;;  %v1226_v58 = vpop.xlane.xlu1 %1225 }
 0x390   : > { %2241 = vpow2.f32 %v1317_v28  ;;  %v1268_v61 = vsub.f32 %v2933_v0, %v1226_v58  ;;  %v1319_v60 = vmul.f32 1.442695, %v1267_v59 }
 0x391   : > { %v3035_v30 = vpop.eup %2229  ;;  %2243 = vpow2.f32 %v1315_v56  ;;  %v1228_v32 = vpop.xlane.xlu0 %1227 }
 0x392   : > { %v3037_v63 = vpop.eup %2231  ;;  %v1321_v34 = vmul.f32 1.442695, %v1268_v61  ;;  %v1269_v3 = vsub.f32 %v2937_v2, %v1228_v32  ;;  %1369 = vadd.xlane.f32.xlu1 %v3035_v30 }
 0x393   : > { %1367 = vadd.xlane.f32.xlu0 %v3037_v63  ;;  %v1230_v62 = vpop.xlane.xlu1 %1229 }
 0x394   : > { %2245 = vpow2.f32 %v1321_v34  ;;  %v1270_v5 = vsub.f32 %v2941_v4, %v1230_v62  ;;  %v1323_v0 = vmul.f32 1.442695, %v1269_v3 }
 0x395   : > { %v3043_v7 = vpop.eup %2233  ;;  %2247 = vpow2.f32 %v1319_v60  ;;  %v1232_v38 = vpop.xlane.xlu0 %1231 }
 0x396   : > { %v3045_v9 = vpop.eup %2235  ;;  %v1325_v40 = vmul.f32 1.442695, %v1270_v5  ;;  %v1271_v14 = vsub.f32 %v2945_v6, %v1232_v38  ;;  %1373 = vadd.xlane.f32.xlu1 %v3043_v7 }
 0x397   : > { %1371 = vadd.xlane.f32.xlu0 %v3045_v9  ;;  %v1234_v2 = vpop.xlane.xlu1 %1233 }
 0x398   : > { %2249 = vpow2.f32 %v1325_v40  ;;  %v1272_v16 = vsub.f32 %v2949_v8, %v1234_v2  ;;  %v1327_v4 = vmul.f32 1.442695, %v1271_v14 }
 0x399   : > { %v3051_v19 = vpop.eup %2237  ;;  %2251 = vpow2.f32 %v1323_v0  ;;  %v1236_v23 = vpop.xlane.xlu0 %1235 }
 0x39a   : > { %v3053_v42 = vpop.eup %2239  ;;  %v1329_v25 = vmul.f32 1.442695, %v1272_v16  ;;  %v1273_v27 = vsub.f32 %v2953_v10, %v1236_v23  ;;  %1377 = vadd.xlane.f32.xlu1 %v3051_v19 }
 0x39b   : > { %1375 = vadd.xlane.f32.xlu0 %v3053_v42  ;;  %v1238_v6 = vpop.xlane.xlu1 %1237 }
 0x39c   : > { %2253 = vpow2.f32 %v1329_v25  ;;  %v1274_v29 = vsub.f32 %v2957_v12, %v1238_v6  ;;  %v1331_v8 = vmul.f32 1.442695, %v1273_v27 }
 0x39d   : > { %v3059_v31 = vpop.eup %2241  ;;  %2255 = vpow2.f32 %v1327_v4  ;;  %v1240_v46 = vpop.xlane.xlu0 %1239 }
 0x39e   : > { %v3061_v33 = vpop.eup %2243  ;;  %v1333_v48 = vmul.f32 1.442695, %v1274_v29  ;;  %v1275_v37 = vsub.f32 %v2961_v15, %v1240_v46  ;;  %1381 = vadd.xlane.f32.xlu1 %v3059_v31 }
 0x39f   : > { %1379 = vadd.xlane.f32.xlu0 %v3061_v33  ;;  %v1242_v10 = vpop.xlane.xlu1 %1241 }
 0x3a0   : > { %2257 = vpow2.f32 %v1333_v48  ;;  %v1276_v17 = vsub.f32 %v2965_v18, %v1242_v10  ;;  %v1335_v12 = vmul.f32 1.442695, %v1275_v37 }
 0x3a1   : > { %v3067_v41 = vpop.eup %2245  ;;  %2259 = vpow2.f32 %v1331_v8  ;;  %v1244_v50 = vpop.xlane.xlu0 %1243 }
 0x3a2   : > { %v3069_v43 = vpop.eup %2247  ;;  %v1337_v52 = vmul.f32 1.442695, %v1276_v17  ;;  %v1277_v22 = vsub.f32 %v2969_v20, %v1244_v50  ;;  %1385 = vadd.xlane.f32.xlu1 %v3067_v41 }
 0x3a3   : > { %1383 = vadd.xlane.f32.xlu0 %v3069_v43  ;;  %v1246_v15 = vpop.xlane.xlu1 %1245 }
 0x3a4   : > { %2261 = vpow2.f32 %v1337_v52  ;;  %v1278_v49 = vsub.f32 %v2973_v21, %v1246_v15  ;;  %v1339_v18 = vmul.f32 1.442695, %v1277_v22 }
 0x3a5   : > { %v3075_v51 = vpop.eup %2249  ;;  %2263 = vpow2.f32 %v1335_v12 }
 0x3a6   : > { %v3077_v54 = vpop.eup %2251  ;;  %v1341_v26 = vmul.f32 1.442695, %v1278_v49  ;;  %1389 = vadd.xlane.f32.xlu1 %v3075_v51 }
 0x3a7   : > { %1387 = vadd.xlane.f32.xlu0 %v3077_v54 }
 0x3a8   : > { %2265 = vpow2.f32 %v1341_v26 }
 0x3a9   : > { %v3081_v20 = vpop.eup %2253  ;;  %2267 = vpow2.f32 %v1339_v18 }
 0x3aa   : > { %v3083_v56 = vpop.eup %2255  ;;  %1393 = vadd.xlane.f32.xlu1 %v3081_v20 }
 0x3ab   : > { %1391 = vadd.xlane.f32.xlu0 %v3083_v56 }
 0x3ad   : > { %v3087_v21 = vpop.eup %2257 }
 0x3ae   : > { %v3089_v53 = vpop.eup %2259  ;;  %1397 = vadd.xlane.f32.xlu1 %v3087_v21 }
 0x3af   : > { %1395 = vadd.xlane.f32.xlu0 %v3089_v53 }
 0x3b1   : > { %v3093_v28 = vpop.eup %2261 }
 0x3b2   : > { %v3095_v59 = vpop.eup %2263  ;;  %1401 = vadd.xlane.f32.xlu1 %v3093_v28 }
 0x3b3   : > { %1399 = vadd.xlane.f32.xlu0 %v3095_v59 }
 0x3b5   : > { %v3099_v58 = vpop.eup %2265 }
 0x3b6   : > { %v3101_v61 = vpop.eup %2267  ;;  %1405 = vadd.xlane.f32.xlu1 %v3099_v58 }
 0x3b7   : > { %1403 = vadd.xlane.f32.xlu0 %v3101_v61 }
 0x3ff   : > { %v1346_v60 = vpop.xlane.xlu1 %1345 }
 0x400   : > { %2269 = vrcp.f32 %v1346_v60 }
 0x403   : > { %v1350_v32 = vpop.xlane.xlu1 %1349 }
 0x404   : > { %2271 = vrcp.f32 %v1350_v32  ;;  %v1344_v34 = vpop.xlane.xlu0 %1343 }
 0x405   : > { %2273 = vrcp.f32 %v1344_v34 }
 0x408   : > { %v1348_v3 = vpop.xlane.xlu0 %1347 }
 0x409   : > { %2275 = vrcp.f32 %v1348_v3 }
 0x40b   : > { %v1354_v62 = vpop.xlane.xlu1 %1353 }
 0x40c   : > { %2277 = vrcp.f32 %v1354_v62  ;;  %v1352_v5 = vpop.xlane.xlu0 %1351 }
 0x40d   : > { %v2270_v0 = vpop.eup %2269  ;;  %2279 = vrcp.f32 %v1352_v5 }
 0x40e   : > { %v1440_v38 = vmul.f32 %v2270_v0, %v2985_v57 }
 0x40f   : > { %v1358_v40 = vpop.xlane.xlu1 %1357 }
 0x410   : > { %v1472_v14 = vmax.f32 %v1440_v38, 0.0001  ;;  %2281 = vrcp.f32 %v1358_v40  ;;  %v1356_v2 = vpop.xlane.xlu0 %1355 }
 0x411   : > { %v2272_v16 = vpop.eup %2271  ;;  %2283 = vrcp.f32 %v1356_v2 }
 0x412   : > { %v2274_v4 = vpop.eup %2273  ;;  %v1504_v23 = vmin.f32 %v1472_v14, 0.9999  ;;  %v1442_v25 = vmul.f32 %v2272_v16, %v2990_v1 }
 0x413   : > { %v1439_v27 = vmul.f32 %v2274_v4, %v2992_v36  ;;  %v1362_v6 = vpop.xlane.xlu1 %1361 }
 0x414   : > { %1536 = vst [vmem:[%s3110_s11 + $0x8] sm:$0xff] %v1504_v23  ;;  %v1474_v57 = vmax.f32 %v1442_v25, 0.0001  ;;  %2285 = vrcp.f32 %v1362_v6  ;;  %v1360_v29 = vpop.xlane.xlu0 %1359 }
 0x415   : > { %v1471_v8 = vmax.f32 %v1439_v27, 0.0001  ;;  %2287 = vrcp.f32 %v1360_v29 }
 0x416   : > { %v2276_v46 = vpop.eup %2275  ;;  %v1506_v48 = vmin.f32 %v1474_v57, 0.9999 }
 0x417   : > { %v1503_v37 = vmin.f32 %v1471_v8, 0.9999  ;;  %v1441_v1 = vmul.f32 %v2276_v46, %v2998_v11  ;;  %v1366_v10 = vpop.xlane.xlu1 %1365 }
 0x418   : > { %1538 = vst [vmem:[%s3110_s11 + $0x18] sm:$0xff] %v1506_v48  ;;  %2289 = vrcp.f32 %v1366_v10  ;;  %v1364_v36 = vpop.xlane.xlu0 %1363 }
 0x419   : > { %v2278_v17 = vpop.eup %2277  ;;  %1535 = vst [vmem:[%s3110_s11] sm:$0xff] %v1503_v37  ;;  %v1473_v12 = vmax.f32 %v1441_v1, 0.0001  ;;  %2291 = vrcp.f32 %v1364_v36 }
 0x41a   : > { %v2280_v50 = vpop.eup %2279  ;;  %v1444_v52 = vmul.f32 %v2278_v17, %v3003_v24 }
 0x41b   : > { %v1505_v22 = vmin.f32 %v1473_v12, 0.9999  ;;  %v1443_v15 = vmul.f32 %v2280_v50, %v3005_v44  ;;  %v1370_v49 = vpop.xlane.xlu1 %1369 }
 0x41c   : > { %v1476_v18 = vmax.f32 %v1444_v52, 0.0001  ;;  %2293 = vrcp.f32 %v1370_v49  ;;  %v1368_v11 = vpop.xlane.xlu0 %1367 }
 0x41d   : > { %v2282_v26 = vpop.eup %2281  ;;  %1537 = vst [vmem:[%s3110_s11 + $0x10] sm:$0xff] %v1505_v22  ;;  %v1475_v60 = vmax.f32 %v1443_v15, 0.0001  ;;  %2295 = vrcp.f32 %v1368_v11 }
 0x41e   : > { %v2284_v32 = vpop.eup %2283  ;;  %v1508_v34 = vmin.f32 %v1476_v18, 0.9999  ;;  %v1446_v3 = vmul.f32 %v2282_v26, %v3011_v35 }
 0x41f   : > { %v1507_v62 = vmin.f32 %v1475_v60, 0.9999  ;;  %v1445_v24 = vmul.f32 %v2284_v32, %v3013_v39  ;;  %v1374_v5 = vpop.xlane.xlu1 %1373 }
 0x420   : > { %1540 = vst [vmem:[%s3110_s11 + $0x28] sm:$0xff] %v1508_v34  ;;  %v1478_v44 = vmax.f32 %v1446_v3, 0.0001  ;;  %2297 = vrcp.f32 %v1374_v5  ;;  %v1372_v0 = vpop.xlane.xlu0 %1371 }
 0x421   : > { %v2286_v38 = vpop.eup %2285  ;;  %1539 = vst [vmem:[%s3110_s11 + $0x20] sm:$0xff] %v1507_v62  ;;  %v1477_v40 = vmax.f32 %v1445_v24, 0.0001  ;;  %2299 = vrcp.f32 %v1372_v0 }
 0x422   : > { %v2288_v14 = vpop.eup %2287  ;;  %v1510_v2 = vmin.f32 %v1478_v44, 0.9999  ;;  %v1448_v16 = vmul.f32 %v2286_v38, %v3019_v45 }
 0x423   : > { %v1509_v4 = vmin.f32 %v1477_v40, 0.9999  ;;  %v1447_v35 = vmul.f32 %v2288_v14, %v3021_v47  ;;  %v1378_v39 = vpop.xlane.xlu1 %1377 }
 0x424   : > { %1542 = vst [vmem:[%s3110_s11 + $0x38] sm:$0xff] %v1510_v2  ;;  %v1480_v23 = vmax.f32 %v1448_v16, 0.0001  ;;  %2301 = vrcp.f32 %v1378_v39  ;;  %v1376_v25 = vpop.xlane.xlu0 %1375 }
 0x425   : > { %v2290_v27 = vpop.eup %2289  ;;  %1541 = vst [vmem:[%s3110_s11 + $0x30] sm:$0xff] %v1509_v4  ;;  %v1479_v6 = vmax.f32 %v1447_v35, 0.0001  ;;  %2303 = vrcp.f32 %v1376_v25 }
 0x426   : > { %v2292_v57 = vpop.eup %2291  ;;  %v1512_v29 = vmin.f32 %v1480_v23, 0.9999  ;;  %v1450_v8 = vmul.f32 %v2290_v27, %v3027_v13 }
 0x427   : > { %v1511_v46 = vmin.f32 %v1479_v6, 0.9999  ;;  %v1449_v45 = vmul.f32 %v2292_v57, %v3029_v55  ;;  %v1382_v47 = vpop.xlane.xlu1 %1381 }
 0x428   : > { %1544 = vst [vmem:[%s3110_s11 + $0x48] sm:$0xff] %v1512_v29  ;;  %v1482_v48 = vmax.f32 %v1450_v8, 0.0001  ;;  %2305 = vrcp.f32 %v1382_v47  ;;  %v1380_v37 = vpop.xlane.xlu0 %1379 }
 0x429   : > { %v2294_v1 = vpop.eup %2293  ;;  %1543 = vst [vmem:[%s3110_s11 + $0x40] sm:$0xff] %v1511_v46  ;;  %v1481_v10 = vmax.f32 %v1449_v45, 0.0001  ;;  %2307 = vrcp.f32 %v1380_v37 }
 0x42a   : > { %v2296_v36 = vpop.eup %2295  ;;  %v1514_v17 = vmin.f32 %v1482_v48, 0.9999  ;;  %v1452_v12 = vmul.f32 %v2294_v1, %v3035_v30 }
 0x42b   : > { %v1513_v50 = vmin.f32 %v1481_v10, 0.9999  ;;  %v1451_v13 = vmul.f32 %v2296_v36, %v3037_v63  ;;  %v1386_v55 = vpop.xlane.xlu1 %1385 }
 0x42c   : > { %1546 = vst [vmem:[%s3110_s11 + $0x58] sm:$0xff] %v1514_v17  ;;  %v1484_v52 = vmax.f32 %v1452_v12, 0.0001  ;;  %2309 = vrcp.f32 %v1386_v55  ;;  %v1384_v22 = vpop.xlane.xlu0 %1383 }
 0x42d   : > { %v2298_v15 = vpop.eup %2297  ;;  %1545 = vst [vmem:[%s3110_s11 + $0x50] sm:$0xff] %v1513_v50  ;;  %v1483_v49 = vmax.f32 %v1451_v13, 0.0001  ;;  %2311 = vrcp.f32 %v1384_v22 }
 0x42e   : > { %v2300_v18 = vpop.eup %2299  ;;  %v1516_v11 = vmin.f32 %v1484_v52, 0.9999  ;;  %v1454_v26 = vmul.f32 %v2298_v15, %v3043_v7 }
 0x42f   : > { %v1515_v60 = vmin.f32 %v1483_v49, 0.9999  ;;  %v1453_v30 = vmul.f32 %v2300_v18, %v3045_v9  ;;  %v1390_v63 = vpop.xlane.xlu1 %1389 }
 0x430   : > { %1548 = vst [vmem:[%s3110_s11 + $0x68] sm:$0xff] %v1516_v11  ;;  %v1486_v32 = vmax.f32 %v1454_v26, 0.0001  ;;  %2313 = vrcp.f32 %v1390_v63  ;;  %v1388_v34 = vpop.xlane.xlu0 %1387 }
 0x431   : > { %v2302_v3 = vpop.eup %2301  ;;  %1547 = vst [vmem:[%s3110_s11 + $0x60] sm:$0xff] %v1515_v60  ;;  %v1485_v62 = vmax.f32 %v1453_v30, 0.0001  ;;  %2315 = vrcp.f32 %v1388_v34 }
 0x432   : > { %v2304_v24 = vpop.eup %2303  ;;  %v1518_v5 = vmin.f32 %v1486_v32, 0.9999  ;;  %v1456_v44 = vmul.f32 %v2302_v3, %v3051_v19 }
 0x433   : > { %v1517_v0 = vmin.f32 %v1485_v62, 0.9999  ;;  %v1455_v7 = vmul.f32 %v2304_v24, %v3053_v42  ;;  %v1394_v9 = vpop.xlane.xlu1 %1393 }
 0x434   : > { %1550 = vst [vmem:[%s3110_s11 + $0x78] sm:$0xff] %v1518_v5  ;;  %v1488_v38 = vmax.f32 %v1456_v44, 0.0001  ;;  %2317 = vrcp.f32 %v1394_v9  ;;  %v1392_v40 = vpop.xlane.xlu0 %1391 }
 0x435   : > { %v2306_v14 = vpop.eup %2305  ;;  %1549 = vst [vmem:[%s3110_s11 + $0x70] sm:$0xff] %v1517_v0  ;;  %v1487_v2 = vmax.f32 %v1455_v7, 0.0001  ;;  %2319 = vrcp.f32 %v1392_v40 }
 0x436   : > { %v2308_v16 = vpop.eup %2307  ;;  %v1520_v4 = vmin.f32 %v1488_v38, 0.9999  ;;  %v1458_v35 = vmul.f32 %v2306_v14, %v3059_v31 }
 0x437   : > { %v1519_v39 = vmin.f32 %v1487_v2, 0.9999  ;;  %v1457_v19 = vmul.f32 %v2308_v16, %v3061_v33  ;;  %v1398_v42 = vpop.xlane.xlu1 %1397 }
 0x438   : > { %1552 = vst [vmem:[%s3110_s11 + $0x88] sm:$0xff] %v1520_v4  ;;  %v1490_v23 = vmax.f32 %v1458_v35, 0.0001  ;;  %2321 = vrcp.f32 %v1398_v42  ;;  %v1396_v25 = vpop.xlane.xlu0 %1395 }
 0x439   : > { %v2310_v27 = vpop.eup %2309  ;;  %1551 = vst [vmem:[%s3110_s11 + $0x80] sm:$0xff] %v1519_v39  ;;  %v1489_v6 = vmax.f32 %v1457_v19, 0.0001  ;;  %2323 = vrcp.f32 %v1396_v25 }
 0x43a   : > { %v2312_v57 = vpop.eup %2311  ;;  %v1522_v29 = vmin.f32 %v1490_v23, 0.9999  ;;  %v1460_v8 = vmul.f32 %v2310_v27, %v3067_v41 }
 0x43b   : > { %v1521_v46 = vmin.f32 %v1489_v6, 0.9999  ;;  %v1459_v31 = vmul.f32 %v2312_v57, %v3069_v43  ;;  %v1402_v33 = vpop.xlane.xlu1 %1401 }
 0x43c   : > { %1554 = vst [vmem:[%s3110_s11 + $0x98] sm:$0xff] %v1522_v29  ;;  %v1492_v45 = vmax.f32 %v1460_v8, 0.0001  ;;  %2325 = vrcp.f32 %v1402_v33  ;;  %v1400_v47 = vpop.xlane.xlu0 %1399 }
 0x43d   : > { %v2314_v48 = vpop.eup %2313  ;;  %1553 = vst [vmem:[%s3110_s11 + $0x90] sm:$0xff] %v1521_v46  ;;  %v1491_v37 = vmax.f32 %v1459_v31, 0.0001  ;;  %2327 = vrcp.f32 %v1400_v47 }
 0x43e   : > { %v2316_v1 = vpop.eup %2315  ;;  %v1524_v10 = vmin.f32 %v1492_v45, 0.9999  ;;  %v1462_v36 = vmul.f32 %v2314_v48, %v3075_v51 }
 0x43f   : > { %v1523_v17 = vmin.f32 %v1491_v37, 0.9999  ;;  %v1461_v41 = vmul.f32 %v2316_v1, %v3077_v54  ;;  %v1406_v43 = vpop.xlane.xlu1 %1405 }
 0x440   : > { %1556 = vst [vmem:[%s3110_s11 + $0xa8] sm:$0xff] %v1524_v10  ;;  %v1494_v12 = vmax.f32 %v1462_v36, 0.0001  ;;  %2329 = vrcp.f32 %v1406_v43  ;;  %v1404_v50 = vpop.xlane.xlu0 %1403 }
 0x441   : > { %v2318_v13 = vpop.eup %2317  ;;  %1555 = vst [vmem:[%s3110_s11 + $0xa0] sm:$0xff] %v1523_v17  ;;  %v1493_v55 = vmax.f32 %v1461_v41, 0.0001  ;;  %2331 = vrcp.f32 %v1404_v50 }
 0x442   : > { %v2320_v52 = vpop.eup %2319  ;;  %v1526_v22 = vmin.f32 %v1494_v12, 0.9999  ;;  %v1464_v15 = vmul.f32 %v2318_v13, %v3081_v20 }
 0x443   : > { %v1525_v51 = vmin.f32 %v1493_v55, 0.9999  ;;  %v1463_v49 = vmul.f32 %v2320_v52, %v3083_v56 }
 0x444   : > { %1558 = vst [vmem:[%s3110_s11 + $0xb8] sm:$0xff] %v1526_v22  ;;  %v1496_v54 = vmax.f32 %v1464_v15, 0.0001 }
 0x445   : > { %v2322_v18 = vpop.eup %2321  ;;  %1557 = vst [vmem:[%s3110_s11 + $0xb0] sm:$0xff] %v1525_v51  ;;  %v1495_v11 = vmax.f32 %v1463_v49, 0.0001 }
 0x446   : > { %v2324_v26 = vpop.eup %2323  ;;  %v1528_v60 = vmin.f32 %v1496_v54, 0.9999  ;;  %v1466_v30 = vmul.f32 %v2322_v18, %v3087_v21 }
 0x447   : > { %v1527_v63 = vmin.f32 %v1495_v11, 0.9999  ;;  %v1465_v32 = vmul.f32 %v2324_v26, %v3089_v53 }
 0x448   : > { %1560 = vst [vmem:[%s3110_s11 + $0xc8] sm:$0xff] %v1528_v60  ;;  %v1498_v20 = vmax.f32 %v1466_v30, 0.0001 }
 0x449   : > { %v2326_v34 = vpop.eup %2325  ;;  %1559 = vst [vmem:[%s3110_s11 + $0xc0] sm:$0xff] %v1527_v63  ;;  %v1497_v3 = vmax.f32 %v1465_v32, 0.0001 }
 0x44a   : > { %v2328_v56 = vpop.eup %2327  ;;  %v1530_v62 = vmin.f32 %v1498_v20, 0.9999  ;;  %v1468_v24 = vmul.f32 %v2326_v34, %v3093_v28 }
 0x44b   : > { %v1529_v5 = vmin.f32 %v1497_v3, 0.9999  ;;  %v1467_v21 = vmul.f32 %v2328_v56, %v3095_v59 }
 0x44c   : > { %1562 = vst [vmem:[%s3110_s11 + $0xd8] sm:$0xff] %v1530_v62  ;;  %v1500_v44 = vmax.f32 %v1468_v24, 0.0001 }
 0x44d   : > { %v2330_v0 = vpop.eup %2329  ;;  %1561 = vst [vmem:[%s3110_s11 + $0xd0] sm:$0xff] %v1529_v5  ;;  %v1499_v53 = vmax.f32 %v1467_v21, 0.0001 }
 0x44e   : > { %v2332_v7 = vpop.eup %2331  ;;  %v1532_v9 = vmin.f32 %v1500_v44, 0.9999  ;;  %v1470_v38 = vmul.f32 %v2330_v0, %v3099_v58 }
 0x44f   : > { %v1531_v40 = vmin.f32 %v1499_v53, 0.9999  ;;  %v1469_v14 = vmul.f32 %v2332_v7, %v3101_v61 }
 0x450   : > { %1564 = vst [vmem:[%s3110_s11 + $0xe8] sm:$0xff] %v1532_v9  ;;  %v1502_v28 = vmax.f32 %v1470_v38, 0.0001 }
 0x451   : > { %1563 = vst [vmem:[%s3110_s11 + $0xe0] sm:$0xff] %v1531_v40  ;;  %v1501_v59 = vmax.f32 %v1469_v14, 0.0001 }
 0x452   : > { %v1534_v2 = vmin.f32 %v1502_v28, 0.9999 }
 0x453   : > { %v1533_v58 = vmin.f32 %v1501_v59, 0.9999 }
 0x454   : > { %1566 = vst [vmem:[%s3110_s11 + $0xf8] sm:$0xff] %v1534_v2 }
 0x455   : > { %1565 = vst [vmem:[%s3110_s11 + $0xf0] sm:$0xff] %v1533_v58 }
 0x456   : > { %2452 = shalt.err (!%p2449_p10)
}
 0x457   : > { %s2453_s10 = scalar_lea.hbm %s3176_s1, 4096  ;;  %s2457_s29 = scalar_lea.hbm %s3230_s7, 8192 }
 0x458   : > { %p2454_p6 = scmp.ne.s32.totalorder %s3176_s1, %s2453_s10  ;;  %p2458_p3 = scmp.lt.s32.totalorder %s3176_s1, %s3230_s7 }
 0x459   : > { %p2459_p11 = scmp.lt.s32.totalorder %s2457_s29, %s2453_s10 }
 0x45a   : > { %p2455_p4 = pnand %p2454_p6, %p3253_p1 }
 0x45b   : > { %p2460_p5 = por %p2459_p11, %p2458_p3 }
 0x45c   : > { %p2456_p8 = pneg %p2455_p4 }
 0x45e   : > { %p2461_p7 = pnand %p2460_p5, %p2456_p8 }
 0x460   : > { %2464 = shalt.err (!%p2461_p7)
}
 0x461   : > { %s2520_s18 = smov 128   ;;  %s2521_s23 = smov 8  }
 0x462   : > { %2138 = dma.vmem_to_hbm [thread:$0]  (%p3253_p1), %s3178_s22, 4096, %s3176_s1, %s1568_s28, %s2520_s18, %s2520_s18, %s2521_s23  }
 0x463 PF: > { %s1596_s16 = sand.u32 1, %s2499_s24   ;;  %p3254_p12 = scmp.ne.s32.totalorder %s3239_s8, 0 }
 0x464   : > { %p3255_p9 = scmp.ge.s32.totalorder %s2511_s27, 2  ;;  %s1597_s12 = scalar_lea.sflag [#allocation4], %s1596_s16 }
 0x466   : > { %p2155_p13 = pnand %p3255_p9, %p3254_p12 }
 0x468   : > { %p2156_p0 = pneg %p2155_p13 }
 0x46a   : > { %2494 = dma.done.wait (%p2156_p0), %s1597_s12, 4096  }
 0x46b   : > { %2496 = vsyncadd (%p2156_p0), %s1597_s12, 4294963200  ;;  %p22_p2 = scmp.ge.s32.totalorder %s2651_s14, 4   ;;  %s3256_s24 = smov %s2503_s25 }
 0x46c   : > { %s3257_s25 = smov %s2507_s26  ;;  %s3258_s26 = smov %s2661_s17 }
 0x46d   : > { %s3259_s27 = smov %s2651_s14  ;;  %24 = sbr.rel (!%p22_p2) target bundleno = 9 (0x9), region = 105 }
 0x472   :  { %1602 = vsyncpa [#allocation3], 1 }
 0x473   :  { %1604 = vsyncpa [#allocation3 + $0x1], 1 }
 0x474   :  { %1605 = vsyncpa [#allocation6], 1 }
 0x475   :  { %1606 = vsyncpa [#allocation9], 1 }
 0x476   :  { %1607 = vsyncpa [#allocation4], 1 }
 0x477   :  { %1609 = vsyncpa [#allocation4 + $0x1], 1 }

</bundles_post_ra>
